<compile_context>
chip_gen: v7x
topology: tpu7x:2x2x1
jax: 0.10.0
libtpu: 0.0.40
codegen_flags: <defaults>
</compile_context>

<pallas_src>
import jax
import jax.numpy as jnp
from jax.experimental import pallas as pl
from jax.experimental.pallas import tpu as pltpu

LN_EPS = 1e-5
L2_EPS = 1e-12


def _layer_norm(x, gamma, beta):
    # Single-pass variance: mean(x*x) - mu*mu. Lets the x*x reduction start without
    # serializing behind (x - mu); gamma folded into the rsqrt scale.
    mu = jnp.mean(x, axis=-1, keepdims=True)
    var = jnp.mean(x * x, axis=-1, keepdims=True) - mu * mu
    scale = jax.lax.rsqrt(var + LN_EPS) * gamma
    return (x - mu) * scale + beta


def classifier_kernel(cell_ref, prot_ref, wproj_ref, wc1_ref, wc2_ref, vec_ref, out_ref):
    H = wproj_ref.shape[2]        # hidden_dim
    HALF = wc2_ref.shape[1]       # hidden_dim // 2
    mm_dtype = wproj_ref.dtype    # bf16 by default (f32 fallback); dot operands only

    # ---- packed parameter views (static indices / slices of VMEM refs: free) ----
    ws, wp = wproj_ref[0], wproj_ref[1]           # (LATENT, H) each
    wc1a, wc1b = wc1_ref[0], wc1_ref[1]           # (H, H) each
    wc2 = wc2_ref[...]                            # (H, HALF)

    bs, gs, bes = vec_ref[0:1, :], vec_ref[1:2, :], vec_ref[2:3, :]
    bp, gp, bep = vec_ref[3:4, :], vec_ref[4:5, :], vec_ref[5:6, :]
    bc1, gc1, bec1 = vec_ref[6:7, :], vec_ref[7:8, :], vec_ref[8:9, :]
    bc2 = vec_ref[9:10, :][:, :HALF]              # (1, HALF)
    w3 = vec_ref[10:11, :][:, :HALF]              # (1, HALF)  = wc3 column as a row
    bc3 = vec_ref[11:12, :][:, :1]                # (1, 1)

    # ---- input normalization (F.normalize, dim=1): rsqrt on squared norm (EUP) ----
    cs = cell_ref[...].astype(jnp.float32)
    pr = prot_ref[...].astype(jnp.float32)
    cs = cs * jax.lax.rsqrt(jnp.maximum(jnp.sum(cs * cs, axis=-1, keepdims=True),
                                        L2_EPS * L2_EPS))
    pr = pr * jax.lax.rsqrt(jnp.maximum(jnp.sum(pr * pr, axis=-1, keepdims=True),
                                        L2_EPS * L2_EPS))

    # ---- state_proj / protein_proj: Linear -> LayerNorm -> ReLU (Dropout = identity) ----
    sf = jnp.dot(cs.astype(mm_dtype), ws, preferred_element_type=jnp.float32) + bs
    sf = jnp.maximum(_layer_norm(sf, gs, bes), 0.0)
    pf = jnp.dot(pr.astype(mm_dtype), wp, preferred_element_type=jnp.float32) + bp
    pf = jnp.maximum(_layer_norm(pf, gp, bep), 0.0)

    # ---- classifier layer 1: concat-free (cat([sf,pf]) @ Wc1 == sf@Wc1a + pf@Wc1b) ----
    h = (jnp.dot(sf.astype(mm_dtype), wc1a, preferred_element_type=jnp.float32)
         + jnp.dot(pf.astype(mm_dtype), wc1b, preferred_element_type=jnp.float32) + bc1)
    h = jnp.maximum(_layer_norm(h, gc1, bec1), 0.0)

    # ---- classifier layer 2: Linear -> ReLU ----
    h2 = jnp.maximum(
        jnp.dot(h.astype(mm_dtype), wc2, preferred_element_type=jnp.float32) + bc2, 0.0)

    # ---- classifier layer 3: (1,HALF) x (TB,HALF)^T -> (1,TB): lane-dense output row ----
    logit = jax.lax.dot_general(w3, h2, (((1,), (1,)), ((), ())),
                                preferred_element_type=jnp.float32) + bc3
    out_ref[...] = jax.nn.sigmoid(logit).astype(out_ref.dtype)


def _pick_batch_tile(B):
    """Batch tile: multiple of 128 (lane-dense output), <= 512, and — for larger
    batches — small enough to give >= 2 grid tiles (v7x megacore sharding)."""
    b128 = ((B + 127) // 128) * 128
    if b128 <= 128:
        return 128
    return min(512, max(128, (b128 // 2 // 128) * 128))


def transition_classifier_forward(cell_state, protein, params, *, matmul_dtype=jnp.bfloat16):
    """Pack params into slabs on the host, run a batch-gridded pallas_call."""
    B, L = cell_state.shape
    H = params["ws"].shape[1]
    HALF = params["wc2"].shape[1]

    # ---- pack 18 parameter arrays into 4 slabs (4 DMAs instead of 18) ----
    w_proj = jnp.stack([params["ws"], params["wp"]]).astype(matmul_dtype)           # (2, L, H)
    w_cls1 = jnp.stack([params["wc1"][:H], params["wc1"][H:]]).astype(matmul_dtype)  # (2, H, H)
    w_cls2 = params["wc2"].astype(matmul_dtype)                                      # (H, HALF)

    def row(v):
        v = jnp.asarray(v, jnp.float32).reshape(-1)
        return jnp.pad(v, (0, H - v.shape[0]))

    vec_slab = jnp.stack([
        row(params["bs"]), row(params["gs"]), row(params["bes"]),
        row(params["bp"]), row(params["gp"]), row(params["bep"]),
        row(params["bc1"]), row(params["gc1"]), row(params["bec1"]),
        row(params["bc2"]),
        row(params["wc3"]),            # (HALF, 1) column stored as a row
        row(params["bc3"]),
    ])                                                                               # (12, H)

    # ---- batch grid: tile batch, pad to a multiple of the tile ----
    TB = _pick_batch_tile(B)
    num_tiles = pl.cdiv(B, TB)
    B_pad = num_tiles * TB
    if B_pad != B:
        pad = B_pad - B
        cell_state = jnp.pad(cell_state, ((0, pad), (0, 0)))
        protein = jnp.pad(protein, ((0, pad), (0, 0)))

    act_spec = pl.BlockSpec((TB, L), lambda i: (i, 0))
    out_spec = pl.BlockSpec((1, TB), lambda i: (i, 0))   # lane-dense output rows

    def full_spec(shape):
        return pl.BlockSpec(shape, lambda i, _nd=len(shape): (0,) * _nd)

    # ---- explicit VMEM budget (generous; clamped to [32 MiB, 64 MiB]) ----
    MB = 1024 * 1024
    slab_bytes = int((w_proj.size + w_cls1.size + w_cls2.size) * w_proj.dtype.itemsize
                     + vec_slab.size * vec_slab.dtype.itemsize)
    act_block_bytes = TB * L * cell_state.dtype.itemsize
    vmem_needed = (2 * slab_bytes                 # grid-constant slabs (buffered)
                   + 2 * 2 * act_block_bytes      # 2 activation inputs, double-buffered
                   + 2 * TB * 4                   # output block, double-buffered
                   + 12 * TB * max(H, L) * 4)     # in-kernel f32 temporaries headroom
    vmem_limit = int(min(64 * MB, max(32 * MB, 2 * vmem_needed)))

    flops = 2 * B_pad * (2 * L * H + 2 * H * H + H * HALF + HALF)
    cost = pl.CostEstimate(
        flops=int(flops),
        transcendentals=int(6 * B_pad),            # 2 L2-rsqrt + 3 LN-rsqrt + sigmoid
        bytes_accessed=int(slab_bytes + 2 * B_pad * L * cell_state.dtype.itemsize + 4 * B_pad),
    )

    out = pl.pallas_call(
        classifier_kernel,
        out_shape=jax.ShapeDtypeStruct((num_tiles, TB), jnp.float32),
        grid=(num_tiles,),
        in_specs=[
            act_spec, act_spec,
            full_spec(w_proj.shape), full_spec(w_cls1.shape),
            full_spec(w_cls2.shape), full_spec(vec_slab.shape),
        ],
        out_specs=out_spec,
        compiler_params=pltpu.CompilerParams(
            dimension_semantics=("parallel",),
            vmem_limit_bytes=vmem_limit,
        ),
        cost_estimate=cost,
    )(cell_state, protein, w_proj, w_cls1, w_cls2, vec_slab)

    return out.reshape(-1)[:B].reshape(B, 1)


def make_params(key, latent_dim, hidden_dim):
    """Deterministic synthetic parameters (shapes from the module's __init__)."""
    ks = jax.random.split(key, 8)
    half = hidden_dim // 2

    def lin(k, fan_in, fan_out):
        scale = 1.0 / jnp.sqrt(fan_in)
        w = jax.random.uniform(k, (fan_in, fan_out), jnp.float32, -scale, scale)
        b = jnp.zeros((1, fan_out), jnp.float32)
        return w, b

    ws, bs = lin(ks[0], latent_dim, hidden_dim)
    wp, bp = lin(ks[1], latent_dim, hidden_dim)
    wc1, bc1 = lin(ks[2], 2 * hidden_dim, hidden_dim)
    wc2, bc2 = lin(ks[3], hidden_dim, half)
    wc3, bc3 = lin(ks[4], half, 1)

    ones = jnp.ones((1, hidden_dim), jnp.float32)
    zeros = jnp.zeros((1, hidden_dim), jnp.float32)
    return dict(
        ws=ws, bs=bs, gs=ones, bes=zeros,
        wp=wp, bp=bp, gp=ones, bep=zeros,
        wc1=wc1, bc1=bc1, gc1=ones, bec1=zeros,
        wc2=wc2, bc2=bc2,
        wc3=wc3, bc3=bc3,
    )


def _l2_normalize_ref(x):
    # torch.nn.functional.normalize(x, dim=1): x / max(||x||_2, eps)
    norm = jnp.sqrt(jnp.sum(x * x, axis=-1, keepdims=True))
    return x / jnp.maximum(norm, L2_EPS)


def _layer_norm_ref(x, gamma, beta):
    # PyTorch nn.LayerNorm: biased variance, eps inside the rsqrt (two-pass form).
    mu = jnp.mean(x, axis=-1, keepdims=True)
    var = jnp.mean((x - mu) ** 2, axis=-1, keepdims=True)
    return (x - mu) * jax.lax.rsqrt(var + LN_EPS) * gamma + beta


def reference_forward(cell_state, protein, p):
    """Pure-JAX reference (original concat formulation) for correctness check."""
    cs = _l2_normalize_ref(cell_state)
    pr = _l2_normalize_ref(protein)
    sf = jnp.maximum(_layer_norm_ref(cs @ p["ws"] + p["bs"], p["gs"], p["bes"]), 0.0)
    pf = jnp.maximum(_layer_norm_ref(pr @ p["wp"] + p["bp"], p["gp"], p["bep"]), 0.0)
    feat = jnp.concatenate([sf, pf], axis=-1)
    h = jnp.maximum(_layer_norm_ref(feat @ p["wc1"] + p["bc1"], p["gc1"], p["bec1"]), 0.0)
    h2 = jnp.maximum(h @ p["wc2"] + p["bc2"], 0.0)
    return jax.nn.sigmoid(h2 @ p["wc3"] + p["bc3"])


if __name__ == "__main__":
    LATENT, HIDDEN = 32, 32
    key = jax.random.PRNGKey(0)
    k_cell, k_prot, k_param, k_cell2, k_prot2 = jax.random.split(key, 5)
    params = make_params(k_param, LATENT, HIDDEN)

    # --- small single-tile batch ---
    B = 8
    cell_state = jax.random.normal(k_cell, (B, LATENT), jnp.float32)
    protein = jax.random.normal(k_prot, (B, LATENT), jnp.float32)
    ref = reference_forward(cell_state, protein, params)

    out_bf16 = jax.block_until_ready(
        transition_classifier_forward(cell_state, protein, params))
    assert out_bf16.shape == (B, 1)
    assert jnp.allclose(out_bf16, ref, atol=3e-2, rtol=3e-2), (out_bf16, ref)

    out_f32 = jax.block_until_ready(
        transition_classifier_forward(cell_state, protein, params,
                                      matmul_dtype=jnp.float32))
    assert jnp.allclose(out_f32, ref, atol=1e-4, rtol=1e-4), (out_f32, ref)

    # --- multi-tile + padded batch (exercises grid of 2 and batch padding) ---
    B2 = 200
    cell2 = jax.random.normal(k_cell2, (B2, LATENT), jnp.float32)
    prot2 = jax.random.normal(k_prot2, (B2, LATENT), jnp.float32)
    ref2 = reference_forward(cell2, prot2, params)
    out2 = jax.block_until_ready(
        transition_classifier_forward(cell2, prot2, params, matmul_dtype=jnp.float32))
    assert out2.shape == (B2, 1)
    assert jnp.allclose(out2, ref2, atol=1e-4, rtol=1e-4), (out2, ref2)

    print("KERNEL_OK")
</pallas_src>

<mosaic_0001>
module attributes {stable_mosaic.version = 11 : i64} {
  func.func @classifier_kernel(%arg0: i32, %arg1: memref<128x32xf32, #tpu.memory_space<vmem>>, %arg2: memref<128x32xf32, #tpu.memory_space<vmem>>, %arg3: memref<2x32x32xbf16, #tpu.memory_space<vmem>>, %arg4: memref<2x32x32xbf16, #tpu.memory_space<vmem>>, %arg5: memref<32x16xbf16, #tpu.memory_space<vmem>>, %arg6: memref<12x32xf32, #tpu.memory_space<vmem>>, %arg7: memref<1x128xf32, #tpu.memory_space<vmem>>) attributes {dimension_semantics = [#tpu.dimension_semantics<parallel>], iteration_bounds = array<i64: 1>, scalar_prefetch = 0 : i64, scratch_operands = 0 : i64, tpu.core_type = #tpu.core_type<tc>, window_params = [{transform_indices = @transform_0, window_bounds = array<i64: 128, 32>}, {transform_indices = @transform_1, window_bounds = array<i64: 128, 32>}, {pipeline_mode = #tpu.pipeline_mode<synchronous>, transform_indices = @transform_2, window_bounds = array<i64: 2, 32, 32>}, {pipeline_mode = #tpu.pipeline_mode<synchronous>, transform_indices = @transform_3, window_bounds = array<i64: 2, 32, 32>}, {pipeline_mode = #tpu.pipeline_mode<synchronous>, transform_indices = @transform_4, window_bounds = array<i64: 32, 16>}, {pipeline_mode = #tpu.pipeline_mode<synchronous>, transform_indices = @transform_5, window_bounds = array<i64: 12, 32>}, {transform_indices = @transform_6, window_bounds = array<i64: 1, 128>}]} {
    %c0 = arith.constant 0 : index
    %c0_0 = arith.constant 0 : index
    %c0_1 = arith.constant 0 : index
    %0 = vector.load %arg3[%c0, %c0_0, %c0_1] : memref<2x32x32xbf16, #tpu.memory_space<vmem>>, vector<1x32x32xbf16>
    %1 = vector.shape_cast %0 : vector<1x32x32xbf16> to vector<32x32xbf16>
    %c1 = arith.constant 1 : index
    %c0_2 = arith.constant 0 : index
    %c0_3 = arith.constant 0 : index
    %2 = vector.load %arg3[%c1, %c0_2, %c0_3] : memref<2x32x32xbf16, #tpu.memory_space<vmem>>, vector<1x32x32xbf16>
    %3 = vector.shape_cast %2 : vector<1x32x32xbf16> to vector<32x32xbf16>
    %c0_4 = arith.constant 0 : index
    %c0_5 = arith.constant 0 : index
    %c0_6 = arith.constant 0 : index
    %4 = vector.load %arg4[%c0_4, %c0_5, %c0_6] : memref<2x32x32xbf16, #tpu.memory_space<vmem>>, vector<1x32x32xbf16>
    %5 = vector.shape_cast %4 : vector<1x32x32xbf16> to vector<32x32xbf16>
    %c1_7 = arith.constant 1 : index
    %c0_8 = arith.constant 0 : index
    %c0_9 = arith.constant 0 : index
    %6 = vector.load %arg4[%c1_7, %c0_8, %c0_9] : memref<2x32x32xbf16, #tpu.memory_space<vmem>>, vector<1x32x32xbf16>
    %7 = vector.shape_cast %6 : vector<1x32x32xbf16> to vector<32x32xbf16>
    %c0_10 = arith.constant 0 : index
    %c0_11 = arith.constant 0 : index
    %8 = vector.load %arg5[%c0_10, %c0_11] : memref<32x16xbf16, #tpu.memory_space<vmem>>, vector<32x16xbf16>
    %c0_12 = arith.constant 0 : index
    %c0_13 = arith.constant 0 : index
    %9 = vector.load %arg6[%c0_12, %c0_13] : memref<12x32xf32, #tpu.memory_space<vmem>>, vector<1x32xf32>
    %c1_14 = arith.constant 1 : index
    %c0_15 = arith.constant 0 : index
    %10 = vector.load %arg6[%c1_14, %c0_15] : memref<12x32xf32, #tpu.memory_space<vmem>>, vector<1x32xf32>
    %c2 = arith.constant 2 : index
    %c0_16 = arith.constant 0 : index
    %11 = vector.load %arg6[%c2, %c0_16] : memref<12x32xf32, #tpu.memory_space<vmem>>, vector<1x32xf32>
    %c3 = arith.constant 3 : index
    %c0_17 = arith.constant 0 : index
    %12 = vector.load %arg6[%c3, %c0_17] : memref<12x32xf32, #tpu.memory_space<vmem>>, vector<1x32xf32>
    %c4 = arith.constant 4 : index
    %c0_18 = arith.constant 0 : index
    %13 = vector.load %arg6[%c4, %c0_18] : memref<12x32xf32, #tpu.memory_space<vmem>>, vector<1x32xf32>
    %c5 = arith.constant 5 : index
    %c0_19 = arith.constant 0 : index
    %14 = vector.load %arg6[%c5, %c0_19] : memref<12x32xf32, #tpu.memory_space<vmem>>, vector<1x32xf32>
    %c6 = arith.constant 6 : index
    %c0_20 = arith.constant 0 : index
    %15 = vector.load %arg6[%c6, %c0_20] : memref<12x32xf32, #tpu.memory_space<vmem>>, vector<1x32xf32>
    %c7 = arith.constant 7 : index
    %c0_21 = arith.constant 0 : index
    %16 = vector.load %arg6[%c7, %c0_21] : memref<12x32xf32, #tpu.memory_space<vmem>>, vector<1x32xf32>
    %c8 = arith.constant 8 : index
    %c0_22 = arith.constant 0 : index
    %17 = vector.load %arg6[%c8, %c0_22] : memref<12x32xf32, #tpu.memory_space<vmem>>, vector<1x32xf32>
    %c9 = arith.constant 9 : index
    %c0_23 = arith.constant 0 : index
    %18 = vector.load %arg6[%c9, %c0_23] : memref<12x32xf32, #tpu.memory_space<vmem>>, vector<1x32xf32>
    %19 = vector.extract_strided_slice %18 {offsets = [0, 0], sizes = [1, 16], strides = [1, 1]} : vector<1x32xf32> to vector<1x16xf32>
    %c10 = arith.constant 10 : index
    %c0_24 = arith.constant 0 : index
    %20 = vector.load %arg6[%c10, %c0_24] : memref<12x32xf32, #tpu.memory_space<vmem>>, vector<1x32xf32>
    %21 = vector.extract_strided_slice %20 {offsets = [0, 0], sizes = [1, 16], strides = [1, 1]} : vector<1x32xf32> to vector<1x16xf32>
    %c11 = arith.constant 11 : index
    %c0_25 = arith.constant 0 : index
    %22 = vector.load %arg6[%c11, %c0_25] : memref<12x32xf32, #tpu.memory_space<vmem>>, vector<1x32xf32>
    %23 = vector.extract_strided_slice %22 {offsets = [0, 0], sizes = [1, 1], strides = [1, 1]} : vector<1x32xf32> to vector<1x1xf32>
    %c0_26 = arith.constant 0 : index
    %c0_27 = arith.constant 0 : index
    %24 = vector.load %arg1[%c0_26, %c0_27] : memref<128x32xf32, #tpu.memory_space<vmem>>, vector<128x32xf32>
    %c0_28 = arith.constant 0 : index
    %c0_29 = arith.constant 0 : index
    %25 = vector.load %arg2[%c0_28, %c0_29] : memref<128x32xf32, #tpu.memory_space<vmem>>, vector<128x32xf32>
    %26 = arith.mulf %24, %24 : vector<128x32xf32>
    %cst = arith.constant dense<0.000000e+00> : vector<128xf32>
    %27 = vector.multi_reduction <add>, %26, %cst [1] : vector<128x32xf32> to vector<128xf32>
    %28 = vector.shape_cast %27 : vector<128xf32> to vector<128x1xf32>
    %cst_30 = arith.constant 1.000000e-24 : f32
    %29 = vector.broadcast %cst_30 : f32 to vector<128x1xf32>
    %30 = arith.maximumf %28, %29 : vector<128x1xf32>
    %31 = math.rsqrt %30 : vector<128x1xf32>
    %32 = vector.broadcast %31 : vector<128x1xf32> to vector<128x32xf32>
    %33 = arith.mulf %24, %32 : vector<128x32xf32>
    %34 = arith.mulf %25, %25 : vector<128x32xf32>
    %cst_31 = arith.constant dense<0.000000e+00> : vector<128xf32>
    %35 = vector.multi_reduction <add>, %34, %cst_31 [1] : vector<128x32xf32> to vector<128xf32>
    %36 = vector.shape_cast %35 : vector<128xf32> to vector<128x1xf32>
    %cst_32 = arith.constant 1.000000e-24 : f32
    %37 = vector.broadcast %cst_32 : f32 to vector<128x1xf32>
    %38 = arith.maximumf %36, %37 : vector<128x1xf32>
    %39 = math.rsqrt %38 : vector<128x1xf32>
    %40 = vector.broadcast %39 : vector<128x1xf32> to vector<128x32xf32>
    %41 = arith.mulf %25, %40 : vector<128x32xf32>
    %42 = arith.truncf %33 : vector<128x32xf32> to vector<128x32xbf16>
    %cst_33 = arith.constant dense<0.000000e+00> : vector<128x32xf32>
    %43 = tpu.matmul %42, %1, %cst_33 {dimension_numbers = #tpu.dot_dimension_numbers<[1], [0], [0], [1], [0, 0, 1, 1], [], []>} : vector<128x32xbf16>, vector<32x32xbf16>, vector<128x32xf32> -> vector<128x32xf32>
    %44 = vector.broadcast %9 : vector<1x32xf32> to vector<128x32xf32>
    %45 = arith.addf %43, %44 : vector<128x32xf32>
    %cst_34 = arith.constant dense<0.000000e+00> : vector<128xf32>
    %46 = vector.multi_reduction <add>, %45, %cst_34 [1] : vector<128x32xf32> to vector<128xf32>
    %47 = vector.shape_cast %46 : vector<128xf32> to vector<128x1xf32>
    %cst_35 = arith.constant 3.200000e+01 : f32
    %48 = vector.broadcast %cst_35 : f32 to vector<128x1xf32>
    %49 = arith.divf %47, %48 : vector<128x1xf32>
    %50 = arith.mulf %45, %45 : vector<128x32xf32>
    %cst_36 = arith.constant dense<0.000000e+00> : vector<128xf32>
    %51 = vector.multi_reduction <add>, %50, %cst_36 [1] : vector<128x32xf32> to vector<128xf32>
    %52 = vector.shape_cast %51 : vector<128xf32> to vector<128x1xf32>
    %cst_37 = arith.constant 3.200000e+01 : f32
    %53 = vector.broadcast %cst_37 : f32 to vector<128x1xf32>
    %54 = arith.divf %52, %53 : vector<128x1xf32>
    %55 = arith.mulf %49, %49 : vector<128x1xf32>
    %56 = arith.subf %54, %55 : vector<128x1xf32>
    %cst_38 = arith.constant 9.99999974E-6 : f32
    %57 = vector.broadcast %cst_38 : f32 to vector<128x1xf32>
    %58 = arith.addf %56, %57 : vector<128x1xf32>
    %59 = math.rsqrt %58 : vector<128x1xf32>
    %60 = vector.broadcast %59 : vector<128x1xf32> to vector<128x32xf32>
    %61 = vector.broadcast %10 : vector<1x32xf32> to vector<128x32xf32>
    %62 = arith.mulf %60, %61 : vector<128x32xf32>
    %63 = vector.broadcast %49 : vector<128x1xf32> to vector<128x32xf32>
    %64 = arith.subf %45, %63 : vector<128x32xf32>
    %65 = arith.mulf %64, %62 : vector<128x32xf32>
    %66 = vector.broadcast %11 : vector<1x32xf32> to vector<128x32xf32>
    %67 = arith.addf %65, %66 : vector<128x32xf32>
    %cst_39 = arith.constant 0.000000e+00 : f32
    %68 = vector.broadcast %cst_39 : f32 to vector<128x32xf32>
    %69 = arith.maximumf %67, %68 : vector<128x32xf32>
    %70 = arith.truncf %41 : vector<128x32xf32> to vector<128x32xbf16>
    %cst_40 = arith.constant dense<0.000000e+00> : vector<128x32xf32>
    %71 = tpu.matmul %70, %3, %cst_40 {dimension_numbers = #tpu.dot_dimension_numbers<[1], [0], [0], [1], [0, 0, 1, 1], [], []>} : vector<128x32xbf16>, vector<32x32xbf16>, vector<128x32xf32> -> vector<128x32xf32>
    %72 = vector.broadcast %12 : vector<1x32xf32> to vector<128x32xf32>
    %73 = arith.addf %71, %72 : vector<128x32xf32>
    %cst_41 = arith.constant dense<0.000000e+00> : vector<128xf32>
    %74 = vector.multi_reduction <add>, %73, %cst_41 [1] : vector<128x32xf32> to vector<128xf32>
    %75 = vector.shape_cast %74 : vector<128xf32> to vector<128x1xf32>
    %cst_42 = arith.constant 3.200000e+01 : f32
    %76 = vector.broadcast %cst_42 : f32 to vector<128x1xf32>
    %77 = arith.divf %75, %76 : vector<128x1xf32>
    %78 = arith.mulf %73, %73 : vector<128x32xf32>
    %cst_43 = arith.constant dense<0.000000e+00> : vector<128xf32>
    %79 = vector.multi_reduction <add>, %78, %cst_43 [1] : vector<128x32xf32> to vector<128xf32>
    %80 = vector.shape_cast %79 : vector<128xf32> to vector<128x1xf32>
    %cst_44 = arith.constant 3.200000e+01 : f32
    %81 = vector.broadcast %cst_44 : f32 to vector<128x1xf32>
    %82 = arith.divf %80, %81 : vector<128x1xf32>
    %83 = arith.mulf %77, %77 : vector<128x1xf32>
    %84 = arith.subf %82, %83 : vector<128x1xf32>
    %cst_45 = arith.constant 9.99999974E-6 : f32
    %85 = vector.broadcast %cst_45 : f32 to vector<128x1xf32>
    %86 = arith.addf %84, %85 : vector<128x1xf32>
    %87 = math.rsqrt %86 : vector<128x1xf32>
    %88 = vector.broadcast %87 : vector<128x1xf32> to vector<128x32xf32>
    %89 = vector.broadcast %13 : vector<1x32xf32> to vector<128x32xf32>
    %90 = arith.mulf %88, %89 : vector<128x32xf32>
    %91 = vector.broadcast %77 : vector<128x1xf32> to vector<128x32xf32>
    %92 = arith.subf %73, %91 : vector<128x32xf32>
    %93 = arith.mulf %92, %90 : vector<128x32xf32>
    %94 = vector.broadcast %14 : vector<1x32xf32> to vector<128x32xf32>
    %95 = arith.addf %93, %94 : vector<128x32xf32>
    %cst_46 = arith.constant 0.000000e+00 : f32
    %96 = vector.broadcast %cst_46 : f32 to vector<128x32xf32>
    %97 = arith.maximumf %95, %96 : vector<128x32xf32>
    %98 = arith.truncf %69 : vector<128x32xf32> to vector<128x32xbf16>
    %cst_47 = arith.constant dense<0.000000e+00> : vector<128x32xf32>
    %99 = tpu.matmul %98, %5, %cst_47 {dimension_numbers = #tpu.dot_dimension_numbers<[1], [0], [0], [1], [0, 0, 1, 1], [], []>} : vector<128x32xbf16>, vector<32x32xbf16>, vector<128x32xf32> -> vector<128x32xf32>
    %100 = arith.truncf %97 : vector<128x32xf32> to vector<128x32xbf16>
    %cst_48 = arith.constant dense<0.000000e+00> : vector<128x32xf32>
    %101 = tpu.matmul %100, %7, %cst_48 {dimension_numbers = #tpu.dot_dimension_numbers<[1], [0], [0], [1], [0, 0, 1, 1], [], []>} : vector<128x32xbf16>, vector<32x32xbf16>, vector<128x32xf32> -> vector<128x32xf32>
    %102 = arith.addf %99, %101 : vector<128x32xf32>
    %103 = vector.broadcast %15 : vector<1x32xf32> to vector<128x32xf32>
    %104 = arith.addf %102, %103 : vector<128x32xf32>
    %cst_49 = arith.constant dense<0.000000e+00> : vector<128xf32>
    %105 = vector.multi_reduction <add>, %104, %cst_49 [1] : vector<128x32xf32> to vector<128xf32>
    %106 = vector.shape_cast %105 : vector<128xf32> to vector<128x1xf32>
    %cst_50 = arith.constant 3.200000e+01 : f32
    %107 = vector.broadcast %cst_50 : f32 to vector<128x1xf32>
    %108 = arith.divf %106, %107 : vector<128x1xf32>
    %109 = arith.mulf %104, %104 : vector<128x32xf32>
    %cst_51 = arith.constant dense<0.000000e+00> : vector<128xf32>
    %110 = vector.multi_reduction <add>, %109, %cst_51 [1] : vector<128x32xf32> to vector<128xf32>
    %111 = vector.shape_cast %110 : vector<128xf32> to vector<128x1xf32>
    %cst_52 = arith.constant 3.200000e+01 : f32
    %112 = vector.broadcast %cst_52 : f32 to vector<128x1xf32>
    %113 = arith.divf %111, %112 : vector<128x1xf32>
    %114 = arith.mulf %108, %108 : vector<128x1xf32>
    %115 = arith.subf %113, %114 : vector<128x1xf32>
    %cst_53 = arith.constant 9.99999974E-6 : f32
    %116 = vector.broadcast %cst_53 : f32 to vector<128x1xf32>
    %117 = arith.addf %115, %116 : vector<128x1xf32>
    %118 = math.rsqrt %117 : vector<128x1xf32>
    %119 = vector.broadcast %118 : vector<128x1xf32> to vector<128x32xf32>
    %120 = vector.broadcast %16 : vector<1x32xf32> to vector<128x32xf32>
    %121 = arith.mulf %119, %120 : vector<128x32xf32>
    %122 = vector.broadcast %108 : vector<128x1xf32> to vector<128x32xf32>
    %123 = arith.subf %104, %122 : vector<128x32xf32>
    %124 = arith.mulf %123, %121 : vector<128x32xf32>
    %125 = vector.broadcast %17 : vector<1x32xf32> to vector<128x32xf32>
    %126 = arith.addf %124, %125 : vector<128x32xf32>
    %cst_54 = arith.constant 0.000000e+00 : f32
    %127 = vector.broadcast %cst_54 : f32 to vector<128x32xf32>
    %128 = arith.maximumf %126, %127 : vector<128x32xf32>
    %129 = arith.truncf %128 : vector<128x32xf32> to vector<128x32xbf16>
    %cst_55 = arith.constant dense<0.000000e+00> : vector<128x16xf32>
    %130 = tpu.matmul %129, %8, %cst_55 {dimension_numbers = #tpu.dot_dimension_numbers<[1], [0], [0], [1], [0, 0, 1, 1], [], []>} : vector<128x32xbf16>, vector<32x16xbf16>, vector<128x16xf32> -> vector<128x16xf32>
    %131 = vector.broadcast %19 : vector<1x16xf32> to vector<128x16xf32>
    %132 = arith.addf %130, %131 : vector<128x16xf32>
    %cst_56 = arith.constant 0.000000e+00 : f32
    %133 = vector.broadcast %cst_56 : f32 to vector<128x16xf32>
    %134 = arith.maximumf %132, %133 : vector<128x16xf32>
    %cst_57 = arith.constant dense<0.000000e+00> : vector<1x128xf32>
    %135 = tpu.matmul %21, %134, %cst_57 {dimension_numbers = #tpu.dot_dimension_numbers<[1], [1], [0], [0], [0, 0, 1, 0], [], []>} : vector<1x16xf32>, vector<128x16xf32>, vector<1x128xf32> -> vector<1x128xf32>
    %136 = vector.broadcast %23 : vector<1x1xf32> to vector<1x128xf32>
    %137 = arith.addf %135, %136 : vector<1x128xf32>
    %138 = arith.negf %137 : vector<1x128xf32>
    %139 = math.exp %138 : vector<1x128xf32>
    %cst_58 = arith.constant 1.000000e+00 : f32
    %140 = vector.broadcast %cst_58 : f32 to vector<1x128xf32>
    %141 = arith.addf %140, %139 : vector<1x128xf32>
    %142 = arith.divf %140, %141 : vector<1x128xf32>
    %c0_59 = arith.constant 0 : index
    %c0_60 = arith.constant 0 : index
    %143 = vector.load %arg7[%c0_59, %c0_60] : memref<1x128xf32, #tpu.memory_space<vmem>>, vector<1x128xf32>
    tpu.vector_store %arg7[%c0_59, %c0_60], %142 {strides = array<i32>} : memref<1x128xf32, #tpu.memory_space<vmem>>, vector<1x128xf32>,
    return
  }
  func.func @transform_0(%arg0: i32) -> (i32, i32) {
    %c0_i32 = arith.constant 0 : i32
    %c0_i32_0 = arith.constant 0 : i32
    return %arg0, %c0_i32 : i32, i32
  }
  func.func @transform_1(%arg0: i32) -> (i32, i32) {
    %c0_i32 = arith.constant 0 : i32
    %c0_i32_0 = arith.constant 0 : i32
    return %arg0, %c0_i32 : i32, i32
  }
  func.func @transform_2(%arg0: i32) -> (i32, i32, i32) {
    %c0_i32 = arith.constant 0 : i32
    %c0_i32_0 = arith.constant 0 : i32
    %c0_i32_1 = arith.constant 0 : i32
    %c0_i32_2 = arith.constant 0 : i32
    return %c0_i32, %c0_i32_0, %c0_i32_1 : i32, i32, i32
  }
  func.func @transform_3(%arg0: i32) -> (i32, i32, i32) {
    %c0_i32 = arith.constant 0 : i32
    %c0_i32_0 = arith.constant 0 : i32
    %c0_i32_1 = arith.constant 0 : i32
    %c0_i32_2 = arith.constant 0 : i32
    return %c0_i32, %c0_i32_0, %c0_i32_1 : i32, i32, i32
  }
  func.func @transform_4(%arg0: i32) -> (i32, i32) {
    %c0_i32 = arith.constant 0 : i32
    %c0_i32_0 = arith.constant 0 : i32
    %c0_i32_1 = arith.constant 0 : i32
    return %c0_i32, %c0_i32_0 : i32, i32
  }
  func.func @transform_5(%arg0: i32) -> (i32, i32) {
    %c0_i32 = arith.constant 0 : i32
    %c0_i32_0 = arith.constant 0 : i32
    %c0_i32_1 = arith.constant 0 : i32
    return %c0_i32, %c0_i32_0 : i32, i32
  }
  func.func @transform_6(%arg0: i32) -> (i32, i32) {
    %c0_i32 = arith.constant 0 : i32
    %c0_i32_0 = arith.constant 0 : i32
    return %arg0, %c0_i32 : i32, i32
  }
}

</mosaic_0001>

<bundles_post_ra>
// kernel: tpu_custom_call.1
= control target key start
LH: loop header
LB: loop body
LE: loop exit
PB: predicated region body
PF: predicated region fallthrough
CT: control target
= control target key end

     0   :  { %vm107_vm0 = vcmask 261120   ;;  %s3929_s0 = inlined_call_operand.vmem [shape: f32[128,32], index: 0, kind: input, shape index: {}]   ;;  %s3930_s1 = inlined_call_operand.vmem [shape: f32[128,32], index: 1, kind: input, shape index: {}]   ;;  %s3931_s2 = inlined_call_operand.vmem [shape: bf16[2,32,32], index: 2, kind: input, shape index: {}]   ;;  %s3932_s3 = inlined_call_operand.vmem [shape: bf16[2,32,32], index: 3, kind: input, shape index: {}]   ;;  %s3933_s4 = inlined_call_operand.vmem [shape: bf16[32,16], index: 4, kind: input, shape index: {}]   ;;  %s3934_s5 = inlined_call_operand.vmem [shape: f32[12,32], index: 5, kind: input, shape index: {}]   ;;  %s3935_s6 = inlined_call_operand.hbm [shape: f32[1,128], index: 6, kind: output, shape index: {}]  }
   0x1   :  { %v2689_v0 = vld [vmem:[%s3930_s1 + $0x10] sm:$0xff]  ;;  %v2694_v1 = vld [vmem:[%s3930_s1] sm:$0xff]  ;;  %v2699_v2 = vld [vmem:[%s3930_s1 + $0x18] sm:$0xff] }
   0x2   :  { %v206_v3 = vmul.f32 %v2689_v0, %v2689_v0  ;;  %v204_v4 = vmul.f32 %v2694_v1, %v2694_v1  ;;  %v207_v5 = vmul.f32 %v2699_v2, %v2699_v2  ;;  %v2710_v6 = vld [vmem:[%s3930_s1 + $0x8] sm:$0xff]  ;;  %v2722_v9 = vld [vmem:[%s3930_s1 + $0x20] sm:$0xff]  ;;  %v2735_v16 = vld [vmem:[%s3930_s1 + $0x38] sm:$0xff] }
   0x3   :  { %v205_v7 = vmul.f32 %v2710_v6, %v2710_v6  ;;  %v2717_v8 = vld [vmem:[%s3930_s1 + $0x28] sm:$0xff]  ;;  %v208_v15 = vmul.f32 %v2722_v9, %v2722_v9  ;;  %v2740_v17 = vld [vmem:[%s3930_s1 + $0x30] sm:$0xff]  ;;  %v211_v20 = vmul.f32 %v2735_v16, %v2735_v16  ;;  %v2756_v23 = vld [vmem:[%s3930_s1 + $0x40] sm:$0xff] }
   0x4   :  { %v226_v10 = vsel %vm107_vm0, %v206_v3, 0.0  ;;  %v220_v11 = vsel %vm107_vm0, %v204_v4, 0.0  ;;  %v229_v12 = vsel %vm107_vm0, %v207_v5, 0.0  ;;  %v209_v14 = vmul.f32 %v2717_v8, %v2717_v8  ;;  %v2751_v22 = vld [vmem:[%s3930_s1 + $0x48] sm:$0xff]  ;;  %v2761_v24 = vld [vmem:[%s3930_s1 + $0x58] sm:$0xff]  ;;  %v2772_v29 = vld [vmem:[%s3930_s1 + $0x50] sm:$0xff] }
   0x5   :  { %227 = vadd.xlane.f32.xlu1 %v226_v10  ;;  %221 = vadd.xlane.f32.xlu0 %v220_v11  ;;  %v223_v13 = vsel %vm107_vm0, %v205_v7, 0.0  ;;  %v232_v19 = vsel %vm107_vm0, %v208_v15, 0.0  ;;  %v210_v21 = vmul.f32 %v2740_v17, %v2740_v17  ;;  %v241_v25 = vsel %vm107_vm0, %v211_v20, 0.0  ;;  %v2777_v30 = vld [vmem:[%s3930_s1 + $0x68] sm:$0xff]  ;;  %v2788_v35 = vld [vmem:[%s3930_s1 + $0x60] sm:$0xff] }
   0x6   :  { %v235_v18 = vsel %vm107_vm0, %v209_v14, 0.0  ;;  %v213_v27 = vmul.f32 %v2751_v22, %v2751_v22  ;;  %v212_v28 = vmul.f32 %v2756_v23, %v2756_v23  ;;  %v215_v33 = vmul.f32 %v2761_v24, %v2761_v24 }
   0x7   :  { %v238_v26 = vsel %vm107_vm0, %v210_v21, 0.0  ;;  %v214_v34 = vmul.f32 %v2772_v29, %v2772_v29  ;;  %v217_v38 = vmul.f32 %v2777_v30, %v2777_v30  ;;  %v216_v39 = vmul.f32 %v2788_v35, %v2788_v35 }
   0x8   :  { %v247_v31 = vsel %vm107_vm0, %v213_v27, 0.0  ;;  %v244_v32 = vsel %vm107_vm0, %v212_v28, 0.0  ;;  %v253_v36 = vsel %vm107_vm0, %v215_v33, 0.0 }
   0x9   :  { %230 = vadd.xlane.f32.xlu1 %v229_v12  ;;  %224 = vadd.xlane.f32.xlu0 %v223_v13  ;;  %v250_v37 = vsel %vm107_vm0, %v214_v34, 0.0 }
   0xd   :  { %236 = vadd.xlane.f32.xlu1 %v235_v18  ;;  %233 = vadd.xlane.f32.xlu0 %v232_v19 }
  0x11   :  { %242 = vadd.xlane.f32.xlu1 %v241_v25  ;;  %239 = vadd.xlane.f32.xlu0 %v238_v26 }
  0x15   :  { %248 = vadd.xlane.f32.xlu1 %v247_v31  ;;  %245 = vadd.xlane.f32.xlu0 %v244_v32 }
  0x16   :  { %11 = vsyncpa [#allocation3], 0  ;;  %v2799_v40 = vld [vmem:[%s3930_s1 + $0x78] sm:$0xff]  ;;  %v2804_v41 = vld [vmem:[%s3930_s1 + $0x70] sm:$0xff]  ;;  %v259_v42 = vsel %vm107_vm0, %v217_v38, 0.0  ;;  %v256_v43 = vsel %vm107_vm0, %v216_v39, 0.0 }
  0x17   :  { %v219_v44 = vmul.f32 %v2799_v40, %v2799_v40  ;;  %v218_v45 = vmul.f32 %v2804_v41, %v2804_v41  ;;  %v2815_v46 = vld [vmem:[%s3929_s0 + $0x8] sm:$0xff]  ;;  %v2820_v47 = vld [vmem:[%s3929_s0] sm:$0xff]  ;;  %v2831_v52 = vld [vmem:[%s3929_s0 + $0x18] sm:$0xff]  ;;  %vm2647_vm1 = vmmov 0   ;;  %vm1963_vm2 = vcmask 130048   ;;  %s2650_s24 = smov [#allocation2]  }
  0x18   :  { %v92_v50 = vmul.f32 %v2815_v46, %v2815_v46  ;;  %v91_v51 = vmul.f32 %v2820_v47, %v2820_v47  ;;  %v2836_v53 = vld [vmem:[%s3929_s0 + $0x10] sm:$0xff]  ;;  %v94_v57 = vmul.f32 %v2831_v52, %v2831_v52  ;;  %v2850_v59 = vld [vmem:[%s3929_s0 + $0x28] sm:$0xff]  ;;  %v2855_v60 = vld [vmem:[%s3929_s0 + $0x20] sm:$0xff]  ;;  %s2098_s25 = sshll.u32 %s2650_s24, 4  ;;  %s2099_s25 = int_to_ptr.vmem [resolvable:$true] %s2098_s25 }
  0x19   :  { %254 = vadd.xlane.f32.xlu1 %v253_v36  ;;  %251 = vadd.xlane.f32.xlu0 %v250_v37  ;;  %v265_v48 = vsel %vm107_vm0, %v219_v44, 0.0  ;;  %v262_v49 = vsel %vm107_vm0, %v218_v45, 0.0  ;;  %v2448_v54 = vld [vmem:[%s3931_s2 + $0x10] sm:$0xff]   ;;  %v93_v58 = vmul.f32 %v2836_v53, %v2836_v53  ;;  %v2449_v61 = vld [vmem:[%s3931_s2 + $0x18] sm:$0xff]   ;;  %v96_v3 = vmul.f32 %v2850_v59, %v2850_v59  ;;  %v2885_v14 = vld [vmem:[%s3929_s0 + $0x48] sm:$0xff]  ;;  %s2622_s26 = scalar_lea.vmem %s2099_s25, 16  ;;  %p2627_p1 = scmp.lt.s32.totalorder %s2099_s25, %s2099_s25 }
  0x1a   :  { %v111_v55 = vsel %vm107_vm0, %v92_v50, 0.0  ;;  %v108_v56 = vsel %vm107_vm0, %v91_v51, 0.0  ;;  %2279 = vmatprep.subr.bf16.mxu1 %v2448_v54  ;;  %v117_v62 = vsel %vm107_vm0, %v94_v57, 0.0  ;;  %v95_v4 = vmul.f32 %v2855_v60, %v2855_v60  ;;  %v2869_v5 = vld [vmem:[%s3929_s0 + $0x38] sm:$0xff]  ;;  %v2874_v7 = vld [vmem:[%s3929_s0 + $0x30] sm:$0xff]  ;;  %v2890_v15 = vld [vmem:[%s3929_s0 + $0x40] sm:$0xff]  ;;  %p2623_p0 = scmp.ne.s32.totalorder %s2099_s25, %s2622_s26 }
  0x1b   :  { %2280 = vmatpush3.bf16.msra.mxu1 %v2448_v54  ;;  %v114_v63 = vsel %vm107_vm0, %v93_v58, 0.0  ;;  %v123_v10 = vsel %vm107_vm0, %v96_v3, 0.0  ;;  %v98_v12 = vmul.f32 %v2869_v5, %v2869_v5  ;;  %v97_v13 = vmul.f32 %v2874_v7, %v2874_v7  ;;  %v2901_v25 = vld [vmem:[%s3929_s0 + $0x58] sm:$0xff]  ;;  %v2906_v26 = vld [vmem:[%s3929_s0 + $0x50] sm:$0xff]  ;;  %v2917_v33 = vld [vmem:[%s3929_s0 + $0x68] sm:$0xff]  ;;  %s2626_s27 = scalar_lea.vmem %s2099_s25, 32 }
  0x1c   :  { %2281 = vmatprep.subr.bf16.mxu1 %v2449_v61  ;;  %v120_v11 = vsel %vm107_vm0, %v95_v4, 0.0  ;;  %v100_v20 = vmul.f32 %v2885_v14, %v2885_v14  ;;  %v99_v21 = vmul.f32 %v2890_v15, %v2890_v15  ;;  %v102_v31 = vmul.f32 %v2901_v25, %v2901_v25  ;;  %v2922_v34 = vld [vmem:[%s3929_s0 + $0x60] sm:$0xff]  ;;  %vm3874_vm3 = vmpackc.low %vm1963_vm2, %vm1963_vm2  ;;  %p2628_p2 = scmp.lt.s32.totalorder %s2626_s27, %s2622_s26 }
  0x1d   :  { %260 = vadd.xlane.f32.xlu1 %v259_v42  ;;  %257 = vadd.xlane.f32.xlu0 %v256_v43  ;;  %v129_v18 = vsel %vm107_vm0, %v98_v12, 0.0  ;;  %v126_v19 = vsel %vm107_vm0, %v97_v13, 0.0  ;;  %v101_v32 = vmul.f32 %v2906_v26, %v2906_v26  ;;  %v104_v38 = vmul.f32 %v2917_v33, %v2917_v33  ;;  %v2933_v42 = vld [vmem:[%s3929_s0 + $0x78] sm:$0xff]  ;;  %v2938_v43 = vld [vmem:[%s3929_s0 + $0x70] sm:$0xff]  ;;  %v2450_v50 = vld [vmem:[%s3931_s2] sm:$0xff]  }
  0x1e   :  { %v135_v27 = vsel %vm107_vm0, %v100_v20, 0.0  ;;  %v132_v28 = vsel %vm107_vm0, %v99_v21, 0.0  ;;  %v141_v36 = vsel %vm107_vm0, %v102_v31, 0.0  ;;  %v103_v39 = vmul.f32 %v2922_v34, %v2922_v34  ;;  %2259 = vmatprep.subr.bf16.mxu0 %v2450_v50  ;;  %p2629_p3 = por %p2628_p2, %p2627_p1 }
  0x1f   :  { %2282 = vmatpush3.bf16.msra.mxu1 %v2449_v61  ;;  %v138_v37 = vsel %vm107_vm0, %v101_v32, 0.0  ;;  %v147_v44 = vsel %vm107_vm0, %v104_v38, 0.0  ;;  %2260 = vmatpush3.bf16.msra.mxu0 %v2450_v50 }
  0x20   :  { %v144_v45 = vsel %vm107_vm0, %v103_v39, 0.0  ;;  %p2630_p4 = pnand %p2629_p3, %p2623_p0 }
  0x21   :  { %266 = vadd.xlane.f32.xlu1 %v265_v48  ;;  %263 = vadd.xlane.f32.xlu0 %v262_v49  ;;  %v106_v48 = vmul.f32 %v2933_v42, %v2933_v42  ;;  %v105_v49 = vmul.f32 %v2938_v43, %v2938_v43 }
  0x23   :  { %v153_v51 = vsel %vm107_vm0, %v106_v48, 0.0  ;;  %v150_v54 = vsel %vm107_vm0, %v105_v49, 0.0 }
  0x25   :  { %112 = vadd.xlane.f32.xlu1 %v111_v55  ;;  %109 = vadd.xlane.f32.xlu0 %v108_v56  ;;  %v2451_v55 = vld [vmem:[%s3931_s2 + $0x8] sm:$0xff]  }
  0x26   :  { %2261 = vmatprep.subr.bf16.mxu0 %v2451_v55 }
  0x27   :  { %2262 = vmatpush3.bf16.msra.mxu0 %v2451_v55 }
  0x29   :  { %118 = vadd.xlane.f32.xlu1 %v117_v62  ;;  %115 = vadd.xlane.f32.xlu0 %v114_v63 }
  0x2d   :  { %124 = vadd.xlane.f32.xlu1 %v123_v10  ;;  %121 = vadd.xlane.f32.xlu0 %v120_v11 }
  0x31   :  { %130 = vadd.xlane.f32.xlu1 %v129_v18  ;;  %127 = vadd.xlane.f32.xlu0 %v126_v19 }
  0x35   :  { %136 = vadd.xlane.f32.xlu1 %v135_v27  ;;  %133 = vadd.xlane.f32.xlu0 %v132_v28 }
  0x39   :  { %142 = vadd.xlane.f32.xlu1 %v141_v36  ;;  %139 = vadd.xlane.f32.xlu0 %v138_v37 }
  0x3d   :  { %148 = vadd.xlane.f32.xlu1 %v147_v44  ;;  %145 = vadd.xlane.f32.xlu0 %v144_v45 }
  0x41   :  { %154 = vadd.xlane.f32.xlu1 %v153_v51  ;;  %151 = vadd.xlane.f32.xlu0 %v150_v54 }
  0x92   :  { %v228_v56 = vpop.xlane.xlu1 %227  ;;  %v222_v57 = vpop.xlane.xlu0 %221 }
  0x93   :  { %v270_v58 = vmax.f32 %v228_v56, 1e-24  ;;  %v268_v61 = vmax.f32 %v222_v57, 1e-24 }
  0x95   :  { %2458 = vrsqrt.f32 %v270_v58 }
  0x96   :  { %v231_v62 = vpop.xlane.xlu1 %230  ;;  %v225_v63 = vpop.xlane.xlu0 %224  ;;  %2460 = vrsqrt.f32 %v268_v61 }
  0x97   :  { %v271_v3 = vmax.f32 %v231_v62, 1e-24  ;;  %v269_v4 = vmax.f32 %v225_v63, 1e-24 }
  0x99   :  { %2462 = vrsqrt.f32 %v271_v3 }
  0x9a   :  { %2464 = vrsqrt.f32 %v269_v4  ;;  %v237_v10 = vpop.xlane.xlu1 %236  ;;  %v234_v11 = vpop.xlane.xlu0 %233 }
  0x9b   :  { %v273_v12 = vmax.f32 %v237_v10, 1e-24  ;;  %v272_v13 = vmax.f32 %v234_v11, 1e-24 }
  0x9d   :  { %2466 = vrsqrt.f32 %v273_v12 }
  0x9e   :  { %2468 = vrsqrt.f32 %v272_v13  ;;  %v243_v18 = vpop.xlane.xlu1 %242  ;;  %v240_v19 = vpop.xlane.xlu0 %239 }
  0x9f   :  { %v275_v20 = vmax.f32 %v243_v18, 1e-24  ;;  %v274_v21 = vmax.f32 %v240_v19, 1e-24  ;;  %v2459_v27 = vpop.eup %2458 }
  0xa0   :  { %v2461_v28 = vpop.eup %2460  ;;  %v302_v44 = vmul.f32 %v2459_v27, %v2689_v0 }
  0xa1   :  { %2470 = vrsqrt.f32 %v275_v20  ;;  %v300_v48 = vmul.f32 %v2461_v28, %v2694_v1 }
  0xa2   :  { %2472 = vrsqrt.f32 %v274_v21  ;;  %v249_v31 = vpop.xlane.xlu1 %248  ;;  %v246_v32 = vpop.xlane.xlu0 %245 }
  0xa3   :  { %v2463_v36 = vpop.eup %2462  ;;  %v277_v37 = vmax.f32 %v249_v31, 1e-24  ;;  %v276_v38 = vmax.f32 %v246_v32, 1e-24 }
  0xa4   :  { %v2465_v39 = vpop.eup %2464  ;;  %v303_v45 = vmul.f32 %v2463_v36, %v2699_v2 }
  0xa5   :  { %2474 = vrsqrt.f32 %v277_v37  ;;  %v301_v49 = vmul.f32 %v2465_v39, %v2710_v6 }
  0xa6   :  { %2476 = vrsqrt.f32 %v276_v38  ;;  %v255_v50 = vpop.xlane.xlu1 %254  ;;  %v252_v51 = vpop.xlane.xlu0 %251  ;;  %v759_v54 = vpack.c.bf16 %v303_v45, %v302_v44 }
  0xa7   :  { %v2467_v55 = vpop.eup %2466  ;;  %v279_v56 = vmax.f32 %v255_v50, 1e-24  ;;  %v278_v57 = vmax.f32 %v252_v51, 1e-24  ;;  %v758_v58 = vpack.c.bf16 %v301_v49, %v300_v48 }
  0xa8   :  { %v2469_v61 = vpop.eup %2468  ;;  %v305_v62 = vmul.f32 %v2467_v55, %v2717_v8 }
  0xa9   :  { %2478 = vrsqrt.f32 %v279_v56  ;;  %2283 = vmatprep.mubr.msk.bf16.mxu1 %vm107_vm0, %v758_v58  ;;  %v304_v0 = vmul.f32 %v2469_v61, %v2722_v9 }
  0xaa   :  { %2480 = vrsqrt.f32 %v278_v57  ;;  %2284 = vmatmul.mubr.msk.bf16.vlgmr.msra.gmra.mrb[0].mxu1 %vm107_vm0, %v759_v54  ;;  %v261_v1 = vpop.xlane.xlu1 %260  ;;  %v258_v2 = vpop.xlane.xlu0 %257 }
  0xab   :  { %v2471_v6 = vpop.eup %2470  ;;  %v281_v63 = vmax.f32 %v261_v1, 1e-24  ;;  %v280_v3 = vmax.f32 %v258_v2, 1e-24  ;;  %v760_v4 = vpack.c.bf16 %v305_v62, %v304_v0 }
  0xac   :  { %v2473_v10 = vpop.eup %2472  ;;  %v307_v11 = vmul.f32 %v2471_v6, %v2735_v16 }
  0xad   :  { %2482 = vrsqrt.f32 %v281_v63  ;;  %2287 = vmatprep.mubr.msk.bf16.mxu1 %vm107_vm0, %v760_v4  ;;  %v306_v8 = vmul.f32 %v2473_v10, %v2740_v17 }
  0xae   :  { %2484 = vrsqrt.f32 %v280_v3  ;;  %v267_v12 = vpop.xlane.xlu1 %266  ;;  %v264_v9 = vpop.xlane.xlu0 %263 }
  0xaf   :  { %v2475_v13 = vpop.eup %2474  ;;  %v283_v18 = vmax.f32 %v267_v12, 1e-24  ;;  %v282_v19 = vmax.f32 %v264_v9, 1e-24  ;;  %v761_v20 = vpack.c.bf16 %v307_v11, %v306_v8 }
  0xb0   :  { %v2477_v21 = vpop.eup %2476  ;;  %v309_v27 = vmul.f32 %v2475_v13, %v2751_v22 }
  0xb1   :  { %2486 = vrsqrt.f32 %v283_v18  ;;  %v308_v28 = vmul.f32 %v2477_v21, %v2756_v23 }
  0xb2   :  { %2488 = vrsqrt.f32 %v282_v19  ;;  %2288 = vmatmul.mubr.msk.bf16.gmra.mrb[4].mxu1 %vm107_vm0, %v761_v20  ;;  %v113_v16 = vpop.xlane.xlu1 %112  ;;  %v110_v31 = vpop.xlane.xlu0 %109 }
  0xb3   :  { %v2479_v32 = vpop.eup %2478  ;;  %v157_v17 = vmax.f32 %v113_v16, 1e-24  ;;  %v156_v36 = vmax.f32 %v110_v31, 1e-24  ;;  %v762_v37 = vpack.c.bf16 %v309_v27, %v308_v28 }
  0xb4   :  { %v2481_v38 = vpop.eup %2480  ;;  %v311_v39 = vmul.f32 %v2479_v32, %v2761_v24 }
  0xb5   :  { %2490 = vrsqrt.f32 %v157_v17  ;;  %2291 = vmatprep.mubr.msk.bf16.mxu1 %vm107_vm0, %v762_v37  ;;  %v310_v22 = vmul.f32 %v2481_v38, %v2772_v29 }
  0xb6   :  { %2492 = vrsqrt.f32 %v156_v36  ;;  %v119_v44 = vpop.xlane.xlu1 %118  ;;  %v116_v23 = vpop.xlane.xlu0 %115 }
  0xb7   :  { %v2483_v45 = vpop.eup %2482  ;;  %v159_v48 = vmax.f32 %v119_v44, 1e-24  ;;  %v158_v49 = vmax.f32 %v116_v23, 1e-24  ;;  %v763_v50 = vpack.c.bf16 %v311_v39, %v310_v22 }
  0xb8   :  { %v2485_v51 = vpop.eup %2484  ;;  %v313_v54 = vmul.f32 %v2483_v45, %v2777_v30 }
  0xb9   :  { %2494 = vrsqrt.f32 %v159_v48  ;;  %v312_v55 = vmul.f32 %v2485_v51, %v2788_v35 }
  0xba   :  { %2496 = vrsqrt.f32 %v158_v49  ;;  %2292 = vmatmul.mubr.msk.bf16.gmra.mrb[8].mxu1 %vm107_vm0, %v763_v50  ;;  %v125_v24 = vpop.xlane.xlu1 %124  ;;  %v122_v56 = vpop.xlane.xlu0 %121 }
  0xbb   :  { %v2487_v57 = vpop.eup %2486  ;;  %v764_v29 = vpack.c.bf16 %v313_v54, %v312_v55  ;;  %v161_v58 = vmax.f32 %v125_v24, 1e-24  ;;  %v160_v61 = vmax.f32 %v122_v56, 1e-24 }
  0xbc   :  { %v2489_v62 = vpop.eup %2488  ;;  %v315_v0 = vmul.f32 %v2487_v57, %v2799_v40 }
  0xbd   :  { %2295 = vmatprep.mubr.msk.bf16.mxu1 %vm107_vm0, %v764_v29  ;;  %v314_v1 = vmul.f32 %v2489_v62, %v2804_v41  ;;  %2498 = vrsqrt.f32 %v161_v58 }
  0xbe   :  { %2500 = vrsqrt.f32 %v160_v61  ;;  %v131_v30 = vpop.xlane.xlu1 %130  ;;  %v128_v35 = vpop.xlane.xlu0 %127 }
  0xbf   :  { %v2491_v2 = vpop.eup %2490  ;;  %v765_v6 = vpack.c.bf16 %v315_v0, %v314_v1  ;;  %v163_v63 = vmax.f32 %v131_v30, 1e-24  ;;  %v162_v3 = vmax.f32 %v128_v35, 1e-24 }
  0xc0   :  { %v2493_v4 = vpop.eup %2492  ;;  %v189_v10 = vmul.f32 %v2491_v2, %v2815_v46 }
  0xc1   :  { %v188_v11 = vmul.f32 %v2493_v4, %v2820_v47  ;;  %2502 = vrsqrt.f32 %v163_v63 }
  0xc2   :  { %2296 = vmatmul.mubr.msk.bf16.gmra.mrb[12].mxu1 %vm107_vm0, %v765_v6  ;;  %2504 = vrsqrt.f32 %v162_v3  ;;  %v137_v40 = vpop.xlane.xlu1 %136  ;;  %v134_v8 = vpop.xlane.xlu0 %133 }
  0xc3   :  { %v2495_v41 = vpop.eup %2494  ;;  %v316_v12 = vpack.c.bf16 %v189_v10, %v188_v11  ;;  %v165_v9 = vmax.f32 %v137_v40, 1e-24  ;;  %v164_v13 = vmax.f32 %v134_v8, 1e-24 }
  0xc4   :  { %v2497_v18 = vpop.eup %2496  ;;  %v191_v19 = vmul.f32 %v2495_v41, %v2831_v52 }
  0xc5   :  { %2263 = vmatprep.mubr.msk.bf16.mxu0 %vm107_vm0, %v316_v12  ;;  %v190_v20 = vmul.f32 %v2497_v18, %v2836_v53  ;;  %2506 = vrsqrt.f32 %v165_v9 }
  0xc6   :  { %2508 = vrsqrt.f32 %v164_v13  ;;  %v143_v46 = vpop.xlane.xlu1 %142  ;;  %v140_v47 = vpop.xlane.xlu0 %139 }
  0xc7   :  { %v2499_v21 = vpop.eup %2498  ;;  %v317_v27 = vpack.c.bf16 %v191_v19, %v190_v20  ;;  %v167_v28 = vmax.f32 %v143_v46, 1e-24  ;;  %v166_v16 = vmax.f32 %v140_v47, 1e-24 }
  0xc8   :  { %v2501_v31 = vpop.eup %2500  ;;  %v193_v32 = vmul.f32 %v2499_v21, %v2850_v59 }
  0xc9   :  { %2264 = vmatmul.mubr.msk.bf16.vlgmr.msra.gmra.mrb[0].mxu0 %vm107_vm0, %v317_v27  ;;  %2510 = vrsqrt.f32 %v167_v28  ;;  %v192_v52 = vmul.f32 %v2501_v31, %v2855_v60 }
  0xca   :  { %2512 = vrsqrt.f32 %v166_v16  ;;  %v149_v17 = vpop.xlane.xlu1 %148  ;;  %v146_v36 = vpop.xlane.xlu0 %145 }
  0xcb   :  { %v2503_v53 = vpop.eup %2502  ;;  %v318_v37 = vpack.c.bf16 %v193_v32, %v192_v52  ;;  %v169_v38 = vmax.f32 %v149_v17, 1e-24  ;;  %v168_v39 = vmax.f32 %v146_v36, 1e-24  ;;  %v3052_v36 = vld [vmem:[%s3934_s5] ss:$0 sm:$0xff] }
  0xcc   :  { %v2505_v22 = vpop.eup %2504  ;;  %v195_v44 = vmul.f32 %v2503_v53, %v2869_v5 }
  0xcd   :  { %2267 = vmatprep.mubr.msk.bf16.mxu0 %vm107_vm0, %v318_v37  ;;  %v194_v23 = vmul.f32 %v2505_v22, %v2874_v7  ;;  %2514 = vrsqrt.f32 %v169_v38 }
  0xce   :  { %2516 = vrsqrt.f32 %v168_v39  ;;  %v155_v59 = vpop.xlane.xlu1 %154  ;;  %v152_v45 = vpop.xlane.xlu0 %151 }
  0xcf   :  { %v2507_v48 = vpop.eup %2506  ;;  %v319_v60 = vpack.c.bf16 %v195_v44, %v194_v23  ;;  %v171_v49 = vmax.f32 %v155_v59, 1e-24  ;;  %v170_v50 = vmax.f32 %v152_v45, 1e-24 }
  0xd0   :  { %v2509_v51 = vpop.eup %2508  ;;  %v197_v54 = vmul.f32 %v2507_v48, %v2885_v14 }
  0xd1   :  { %2268 = vmatmul.mubr.msk.bf16.gmra.mrb[4].mxu0 %vm107_vm0, %v319_v60  ;;  %2518 = vrsqrt.f32 %v171_v49  ;;  %v196_v5 = vmul.f32 %v2509_v51, %v2890_v15 }
  0xd2   :  { %2520 = vrsqrt.f32 %v170_v50 }
  0xd3   :  { %v2511_v55 = vpop.eup %2510  ;;  %v320_v24 = vpack.c.bf16 %v197_v54, %v196_v5 }
  0xd4   :  { %v2513_v7 = vpop.eup %2512  ;;  %v199_v56 = vmul.f32 %v2511_v55, %v2901_v25 }
  0xd5   :  { %2271 = vmatprep.mubr.msk.bf16.mxu0 %vm107_vm0, %v320_v24  ;;  %v198_v57 = vmul.f32 %v2513_v7, %v2906_v26  ;;  %v3005_v26 = vld [vmem:[%s3934_s5 + $0x3] ss:$0 sm:$0xff] }
  0xd7   :  { %v2515_v29 = vpop.eup %2514  ;;  %v321_v58 = vpack.c.bf16 %v199_v56, %v198_v57 }
  0xd8   :  { %v2517_v61 = vpop.eup %2516  ;;  %v201_v14 = vmul.f32 %v2515_v29, %v2917_v33 }
  0xd9   :  { %2272 = vmatmul.mubr.msk.bf16.gmra.mrb[8].mxu0 %vm107_vm0, %v321_v58  ;;  %v200_v62 = vmul.f32 %v2517_v61, %v2922_v34 }
  0xdb   :  { %v2519_v15 = vpop.eup %2518  ;;  %v322_v0 = vpack.c.bf16 %v201_v14, %v200_v62 }
  0xdc   :  { %v2521_v1 = vpop.eup %2520  ;;  %v203_v30 = vmul.f32 %v2519_v15, %v2933_v42 }
  0xdd   :  { %2275 = vmatprep.mubr.msk.bf16.mxu0 %vm107_vm0, %v322_v0  ;;  %v202_v25 = vmul.f32 %v2521_v1, %v2938_v43 }
  0xdf   :  { %v323_v35 = vpack.c.bf16 %v203_v30, %v202_v25 }
  0xe1   :  { %2276 = vmatmul.mubr.msk.bf16.gmra.mrb[12].mxu0 %vm107_vm0, %v323_v35 }
 0x17d   :  { %v2285_v33 = vpop.f32.mrb[0].mxu1 }
 0x17e   :  { %v3008_v34 = vadd.f32 %v2285_v33, %v3005_v26  ;;  %v840_v2 = vpop.f32.mrb[1].mxu1 }
 0x17f   :  { %v2286_v6 = vpop.f32.mrb[2].mxu1  ;;  %v3011_v42 = vadd.f32 %v3005_v26, %v840_v2 }
 0x180   :  { %v3014_v63 = vadd.f32 %v2286_v6, %v3005_v26  ;;  %v843_v43 = vpop.f32.mrb[3].mxu1  ;;  %v909_v3 = vsel %vm107_vm0, %v3008_v34, 0.0  ;;  %v969_v59 = vmul.f32 %v3008_v34, %v3008_v34 }
 0x181   :  { %910 = vadd.xlane.f32.xlu0 %v909_v3  ;;  %v3019_v4 = vadd.f32 %v3005_v26, %v843_v43  ;;  %v903_v11 = vsel %vm107_vm0, %v3011_v42, 0.0  ;;  %v967_v49 = vmul.f32 %v3011_v42, %v3011_v42 }
 0x182   :  { %v912_v10 = vsel %vm107_vm0, %v3014_v63, 0.0  ;;  %v970_v48 = vmul.f32 %v3014_v63, %v3014_v63  ;;  %v989_v60 = vsel %vm107_vm0, %v969_v59, 0.0 }
 0x183   :  { %913 = vadd.xlane.f32.xlu1 %v912_v10  ;;  %v906_v41 = vsel %vm107_vm0, %v3019_v4, 0.0  ;;  %v968_v55 = vmul.f32 %v3019_v4, %v3019_v4  ;;  %v983_v58 = vsel %vm107_vm0, %v967_v49, 0.0 }
 0x184   :  { %v992_v5 = vsel %vm107_vm0, %v970_v48, 0.0 }
 0x185   :  { %v2289_v40 = vpop.f32.mrb[4].mxu1  ;;  %904 = vadd.xlane.f32.xlu0 %v903_v11  ;;  %v986_v62 = vsel %vm107_vm0, %v968_v55, 0.0 }
 0x186   :  { %v856_v8 = vpop.f32.mrb[5].mxu1  ;;  %v3088_v29 = vadd.f32 %v2289_v40, %v3005_v26 }
 0x187   :  { %v2290_v12 = vpop.f32.mrb[6].mxu1  ;;  %907 = vadd.xlane.f32.xlu1 %v906_v41  ;;  %v3099_v15 = vadd.f32 %v3005_v26, %v856_v8 }
 0x188   :  { %v859_v9 = vpop.f32.mrb[7].mxu1  ;;  %v3095_v14 = vadd.f32 %v2290_v12, %v3005_v26  ;;  %v921_v0 = vsel %vm107_vm0, %v3088_v29, 0.0  ;;  %v973_v11 = vmul.f32 %v3088_v29, %v3088_v29 }
 0x189   :  { %v3107_v35 = vadd.f32 %v3005_v26, %v859_v9  ;;  %v915_v10 = vsel %vm107_vm0, %v3099_v15, 0.0  ;;  %v971_v9 = vmul.f32 %v3099_v15, %v3099_v15 }
 0x18a   :  { %v924_v33 = vsel %vm107_vm0, %v3095_v14, 0.0  ;;  %v974_v41 = vmul.f32 %v3095_v14, %v3095_v14  ;;  %v1001_v12 = vsel %vm107_vm0, %v973_v11, 0.0 }
 0x18b   :  { %v918_v8 = vsel %vm107_vm0, %v3107_v35, 0.0 }
 0x18d   :  { %v3027_v13 = vpop.f32.mrb[8].mxu1 }
 0x18e   :  { %v872_v18 = vpop.f32.mrb[9].mxu1  ;;  %v3145_v59 = vadd.f32 %v3027_v13, %v3005_v26 }
 0x18f   :  { %v3030_v19 = vadd.f32 %v3005_v26, %v872_v18  ;;  %v3032_v20 = vpop.f32.mrb[10].mxu1 }
 0x190   :  { %v875_v46 = vpop.f32.mrb[11].mxu1 }
 0x191   :  { %v3035_v47 = vadd.f32 %v3005_v26, %v875_v46 }
 0x195   :  { %v2297_v21 = vpop.f32.mrb[12].mxu1 }
 0x196   :  { %v3038_v27 = vadd.f32 %v2297_v21, %v3005_v26  ;;  %v888_v28 = vpop.f32.mrb[13].mxu1 }
 0x197   :  { %v3041_v16 = vadd.f32 %v3005_v26, %v888_v28  ;;  %v2298_v31 = vpop.f32.mrb[14].mxu1  ;;  %v1004_v28 = vsel %vm107_vm0, %v974_v41, 0.0 }
 0x198   :  { %v3044_v32 = vadd.f32 %v2298_v31, %v3005_v26  ;;  %v891_v52 = vpop.f32.mrb[15].mxu1  ;;  %v972_v31 = vmul.f32 %v3107_v35, %v3107_v35 }
 0x199   :  { %v3047_v17 = vadd.f32 %v3005_v26, %v891_v52 }
 0x19a   :  { %v998_v49 = vsel %vm107_vm0, %v972_v31, 0.0 }
 0x19b   :  { %v942_v11 = vsel %vm107_vm0, %v3047_v17, 0.0 }
 0x19c   :  { %v3054_v53 = vpop.f32.mrb[0].mxu0 }
 0x19d   :  { %v398_v37 = vpop.f32.mrb[1].mxu0 }
 0x19e   :  { %v3057_v38 = vadd.f32 %v3052_v36, %v398_v37  ;;  %v3059_v39 = vpop.f32.mrb[2].mxu0 }
 0x19f   :  { %v401_v22 = vpop.f32.mrb[3].mxu0  ;;  %v3207_v31 = vadd.f32 %v3059_v39, %v3052_v36 }
 0x1a0   :  { %v3062_v44 = vadd.f32 %v3052_v36, %v401_v22  ;;  %v461_v23 = vsel %vm107_vm0, %v3057_v38, 0.0 }
 0x1a1   :  { %462 = vadd.xlane.f32.xlu0 %v461_v23 }
 0x1a2   :  { %v464_v45 = vsel %vm107_vm0, %v3062_v44, 0.0 }
 0x1a3   :  { %465 = vadd.xlane.f32.xlu1 %v464_v45  ;;  %v995_v45 = vsel %vm107_vm0, %v971_v9, 0.0 }
 0x1a4   :  { %v2269_v50 = vpop.f32.mrb[4].mxu0 }
 0x1a5   :  { %990 = vadd.xlane.f32.xlu0 %v989_v60  ;;  %v3076_v51 = vadd.f32 %v2269_v50, %v3052_v36  ;;  %v414_v54 = vpop.f32.mrb[5].mxu0  ;;  %v3153_v60 = vadd.f32 %v3032_v20, %v3005_v26  ;;  %v933_v50 = vsel %vm107_vm0, %v3145_v59, 0.0  ;;  %v930_v26 = vsel %vm107_vm0, %v3035_v47, 0.0 }
 0x1a6   :  { %v3082_v24 = vadd.f32 %v3052_v36, %v414_v54  ;;  %v2270_v7 = vpop.f32.mrb[6].mxu0  ;;  %v927_v54 = vsel %vm107_vm0, %v3030_v19, 0.0 }
 0x1a7   :  { %993 = vadd.xlane.f32.xlu1 %v992_v5  ;;  %v3085_v56 = vadd.f32 %v2270_v7, %v3052_v36  ;;  %v417_v57 = vpop.f32.mrb[7].mxu0  ;;  %v936_v13 = vsel %vm107_vm0, %v3153_v60, 0.0  ;;  %v977_v5 = vmul.f32 %v3145_v59, %v3145_v59  ;;  %v978_v20 = vmul.f32 %v3153_v60, %v3153_v60 }
 0x1a8   :  { %v3092_v61 = vadd.f32 %v3052_v36, %v417_v57  ;;  %v975_v7 = vmul.f32 %v3030_v19, %v3030_v19 }
 0x1a9   :  { %984 = vadd.xlane.f32.xlu0 %v983_v58  ;;  %v1013_v55 = vsel %vm107_vm0, %v977_v5, 0.0  ;;  %v1016_v57 = vsel %vm107_vm0, %v978_v20, 0.0  ;;  %v976_v58 = vmul.f32 %v3035_v47, %v3035_v47 }
 0x1aa   :  { %v476_v20 = vsel %vm107_vm0, %v3092_v61, 0.0 }
 0x1ab   :  { %987 = vadd.xlane.f32.xlu1 %v986_v62  ;;  %v1007_v62 = vsel %vm107_vm0, %v975_v7, 0.0  ;;  %v530_v7 = vmul.f32 %v3082_v24, %v3082_v24 }
 0x1ac   :  { %v2273_v1 = vpop.f32.mrb[8].mxu0 }
 0x1ad   :  { %922 = vadd.xlane.f32.xlu0 %v921_v0  ;;  %v3104_v30 = vadd.f32 %v2273_v1, %v3052_v36  ;;  %v430_v25 = vpop.f32.mrb[9].mxu0  ;;  %v1010_v0 = vsel %vm107_vm0, %v976_v58, 0.0  ;;  %v945_v1 = vsel %vm107_vm0, %v3038_v27, 0.0  ;;  %v531_v58 = vmul.f32 %v3092_v61, %v3092_v61 }
 0x1ae   :  { %v3112_v2 = vadd.f32 %v3052_v36, %v430_v25  ;;  %v2274_v6 = vpop.f32.mrb[10].mxu0  ;;  %v2452_v25 = vld [vmem:[%s3932_s3 + $0x10] sm:$0xff]  }
 0x1af   :  { %925 = vadd.xlane.f32.xlu1 %v924_v33  ;;  %v3115_v43 = vadd.f32 %v2274_v6, %v3052_v36  ;;  %v433_v3 = vpop.f32.mrb[11].mxu0  ;;  %v948_v33 = vsel %vm107_vm0, %v3044_v32, 0.0  ;;  %2299 = vmatprep.subr.bf16.mxu0 %v2452_v25  ;;  %v939_v6 = vsel %vm107_vm0, %v3041_v16, 0.0 }
 0x1b0   :  { %v3122_v40 = vadd.f32 %v3052_v36, %v433_v3  ;;  %2300 = vmatpush3.bf16.msra.mxu0 %v2452_v25  ;;  %v981_v3 = vmul.f32 %v3038_v27, %v3038_v27  ;;  %v533_v25 = vmul.f32 %v3085_v56, %v3085_v56 }
 0x1b1   :  { %916 = vadd.xlane.f32.xlu0 %v915_v10  ;;  %v2453_v10 = vld [vmem:[%s3932_s3 + $0x18] sm:$0xff]  }
 0x1b2   :  { %2301 = vmatprep.subr.bf16.mxu0 %v2453_v10  ;;  %v1025_v41 = vsel %vm107_vm0, %v981_v3, 0.0  ;;  %v563_v3 = vsel %vm107_vm0, %v533_v25, 0.0 }
 0x1b3   :  { %919 = vadd.xlane.f32.xlu1 %v918_v8  ;;  %v982_v8 = vmul.f32 %v3044_v32, %v3044_v32 }
 0x1b4   :  { %v2277_v18 = vpop.f32.mrb[12].mxu0  ;;  %2302 = vmatpush3.bf16.msra.mxu0 %v2453_v10  ;;  %v485_v10 = vsel %vm107_vm0, %v3112_v2, 0.0 }
 0x1b5   :  { %1002 = vadd.xlane.f32.xlu0 %v1001_v12  ;;  %v3132_v46 = vadd.f32 %v2277_v18, %v3052_v36  ;;  %v446_v21 = vpop.f32.mrb[13].mxu0  ;;  %v979_v12 = vmul.f32 %v3041_v16, %v3041_v16  ;;  %v1028_v9 = vsel %vm107_vm0, %v982_v8, 0.0  ;;  %v980_v18 = vmul.f32 %v3047_v17, %v3047_v17 }
 0x1b6   :  { %v3138_v52 = vadd.f32 %v3052_v36, %v446_v21  ;;  %v2278_v37 = vpop.f32.mrb[14].mxu0  ;;  %v3202_v21 = vadd.f32 %v3054_v53, %v3052_v36  ;;  %v470_v53 = vsel %vm107_vm0, %v3207_v31, 0.0  ;;  %v491_v8 = vsel %vm107_vm0, %v3104_v30, 0.0 }
 0x1b7   :  { %1005 = vadd.xlane.f32.xlu1 %v1004_v28  ;;  %v3141_v22 = vadd.f32 %v2278_v37, %v3052_v36  ;;  %v449_v23 = vpop.f32.mrb[15].mxu0  ;;  %v1019_v28 = vsel %vm107_vm0, %v979_v12, 0.0  ;;  %v1022_v37 = vsel %vm107_vm0, %v980_v18, 0.0  ;;  %v494_v12 = vsel %vm107_vm0, %v3115_v43, 0.0 }
 0x1b8   :  { %v3149_v48 = vadd.f32 %v3052_v36, %v449_v23  ;;  %v467_v23 = vsel %vm107_vm0, %v3202_v21, 0.0  ;;  %v528_v39 = vmul.f32 %v3202_v21, %v3202_v21 }
 0x1b9   :  { %996 = vadd.xlane.f32.xlu0 %v995_v45  ;;  %v526_v45 = vmul.f32 %v3057_v38, %v3057_v38 }
 0x1bb   :  { %999 = vadd.xlane.f32.xlu1 %v998_v49  ;;  %v527_v49 = vmul.f32 %v3062_v44, %v3062_v44  ;;  %v542_v36 = vsel %vm107_vm0, %v526_v45, 0.0 }
 0x1bd   :  { %934 = vadd.xlane.f32.xlu0 %v933_v50  ;;  %v545_v50 = vsel %vm107_vm0, %v527_v49, 0.0  ;;  %v497_v49 = vsel %vm107_vm0, %v3138_v52, 0.0 }
 0x1bf   :  { %937 = vadd.xlane.f32.xlu1 %v936_v13  ;;  %v529_v13 = vmul.f32 %v3207_v31, %v3207_v31 }
 0x1c1   :  { %928 = vadd.xlane.f32.xlu0 %v927_v54  ;;  %v548_v54 = vsel %vm107_vm0, %v528_v39, 0.0  ;;  %v551_v5 = vsel %vm107_vm0, %v529_v13, 0.0  ;;  %v503_v39 = vsel %vm107_vm0, %v3132_v46, 0.0  ;;  %v506_v13 = vsel %vm107_vm0, %v3141_v22, 0.0 }
 0x1c3   :  { %931 = vadd.xlane.f32.xlu1 %v930_v26  ;;  %v473_v26 = vsel %vm107_vm0, %v3082_v24, 0.0 }
 0x1c5   :  { %1014 = vadd.xlane.f32.xlu0 %v1013_v55  ;;  %v479_v55 = vsel %vm107_vm0, %v3076_v51, 0.0 }
 0x1c7   :  { %1017 = vadd.xlane.f32.xlu1 %v1016_v57  ;;  %v482_v57 = vsel %vm107_vm0, %v3085_v56, 0.0 }
 0x1c9   :  { %1008 = vadd.xlane.f32.xlu0 %v1007_v62  ;;  %v554_v62 = vsel %vm107_vm0, %v530_v7, 0.0 }
 0x1cb   :  { %1011 = vadd.xlane.f32.xlu1 %v1010_v0  ;;  %v532_v0 = vmul.f32 %v3076_v51, %v3076_v51 }
 0x1cd   :  { %946 = vadd.xlane.f32.xlu0 %v945_v1  ;;  %v557_v1 = vsel %vm107_vm0, %v531_v58, 0.0 }
 0x1cf   :  { %949 = vadd.xlane.f32.xlu1 %v948_v33  ;;  %v560_v33 = vsel %vm107_vm0, %v532_v0, 0.0 }
 0x1d1   :  { %940 = vadd.xlane.f32.xlu0 %v939_v6  ;;  %v3248_v6 = vld [vmem:[%s3932_s3] sm:$0xff]  }
 0x1d2   :  { %2319 = vmatprep.subr.bf16.mxu0 %v3248_v6 }
 0x1d3   :  { %943 = vadd.xlane.f32.xlu1 %v942_v11  ;;  %v488_v11 = vsel %vm107_vm0, %v3122_v40, 0.0 }
 0x1d5   :  { %1026 = vadd.xlane.f32.xlu0 %v1025_v41  ;;  %v534_v41 = vmul.f32 %v3112_v2, %v3112_v2 }
 0x1d7   :  { %1029 = vadd.xlane.f32.xlu1 %v1028_v9  ;;  %v535_v9 = vmul.f32 %v3122_v40, %v3122_v40  ;;  %v566_v18 = vsel %vm107_vm0, %v534_v41, 0.0 }
 0x1d9   :  { %1020 = vadd.xlane.f32.xlu0 %v1019_v28  ;;  %v536_v28 = vmul.f32 %v3104_v30, %v3104_v30 }
 0x1db   :  { %1023 = vadd.xlane.f32.xlu1 %v1022_v37  ;;  %v569_v37 = vsel %vm107_vm0, %v535_v9, 0.0  ;;  %v572_v45 = vsel %vm107_vm0, %v536_v28, 0.0 }
 0x1dd   :  { %468 = vadd.xlane.f32.xlu0 %v467_v23  ;;  %v537_v23 = vmul.f32 %v3115_v43, %v3115_v43 }
 0x1df   :  { %471 = vadd.xlane.f32.xlu1 %v470_v53  ;;  %v575_v53 = vsel %vm107_vm0, %v537_v23, 0.0 }
 0x1e1   :  { %543 = vadd.xlane.f32.xlu0 %v542_v36  ;;  %v500_v36 = vsel %vm107_vm0, %v3149_v48, 0.0 }
 0x1e3   :  { %546 = vadd.xlane.f32.xlu1 %v545_v50  ;;  %v538_v50 = vmul.f32 %v3138_v52, %v3138_v52 }
 0x1e5   :  { %549 = vadd.xlane.f32.xlu0 %v548_v54  ;;  %v539_v54 = vmul.f32 %v3149_v48, %v3149_v48 }
 0x1e7   :  { %552 = vadd.xlane.f32.xlu1 %v551_v5  ;;  %v578_v5 = vsel %vm107_vm0, %v538_v50, 0.0 }
 0x1e9   :  { %474 = vadd.xlane.f32.xlu0 %v473_v26  ;;  %v540_v26 = vmul.f32 %v3132_v46, %v3132_v46 }
 0x1eb   :  { %477 = vadd.xlane.f32.xlu1 %v476_v20  ;;  %v581_v20 = vsel %vm107_vm0, %v539_v54, 0.0  ;;  %v584_v7 = vsel %vm107_vm0, %v540_v26, 0.0 }
 0x1ed   :  { %480 = vadd.xlane.f32.xlu0 %v479_v55  ;;  %v541_v55 = vmul.f32 %v3141_v22, %v3141_v22 }
 0x1ef   :  { %483 = vadd.xlane.f32.xlu1 %v482_v57  ;;  %v587_v57 = vsel %vm107_vm0, %v541_v55, 0.0 }
 0x1f1   :  { %555 = vadd.xlane.f32.xlu0 %v554_v62 }
 0x1f3   :  { %558 = vadd.xlane.f32.xlu1 %v557_v1 }
 0x1f5   :  { %561 = vadd.xlane.f32.xlu0 %v560_v33 }
 0x1f7   :  { %564 = vadd.xlane.f32.xlu1 %v563_v3 }
 0x1f9   :  { %486 = vadd.xlane.f32.xlu0 %v485_v10 }
 0x1fb   :  { %489 = vadd.xlane.f32.xlu1 %v488_v11 }
 0x1fd   :  { %492 = vadd.xlane.f32.xlu0 %v491_v8 }
 0x1ff   :  { %495 = vadd.xlane.f32.xlu1 %v494_v12 }
 0x201   :  { %567 = vadd.xlane.f32.xlu0 %v566_v18 }
 0x203   :  { %570 = vadd.xlane.f32.xlu1 %v569_v37 }
 0x205   :  { %573 = vadd.xlane.f32.xlu0 %v572_v45 }
 0x207   :  { %576 = vadd.xlane.f32.xlu1 %v575_v53 }
 0x209   :  { %498 = vadd.xlane.f32.xlu0 %v497_v49 }
 0x20b   :  { %501 = vadd.xlane.f32.xlu1 %v500_v36 }
 0x20d   :  { %504 = vadd.xlane.f32.xlu0 %v503_v39 }
 0x20e   :  { %v911_v58 = vpop.xlane.xlu0 %910 }
 0x20f   :  { %507 = vadd.xlane.f32.xlu1 %v506_v13  ;;  %v953_v33 = vmul.f32 0.03125, %v911_v58 }
 0x210   :  { %v914_v62 = vpop.xlane.xlu1 %913 }
 0x211   :  { %579 = vadd.xlane.f32.xlu0 %v578_v5  ;;  %v954_v10 = vmul.f32 0.03125, %v914_v62  ;;  %v1049_v8 = vmul.f32 %v953_v33, %v953_v33 }
 0x212   :  { %v905_v0 = vpop.xlane.xlu0 %904 }
 0x213   :  { %582 = vadd.xlane.f32.xlu1 %v581_v20  ;;  %v3296_v41 = vmul.f32 0.03125, %v905_v0  ;;  %v1050_v28 = vmul.f32 %v954_v10, %v954_v10 }
 0x214   :  { %v908_v1 = vpop.xlane.xlu1 %907 }
 0x215   :  { %585 = vadd.xlane.f32.xlu0 %v584_v7  ;;  %v3298_v9 = vmul.f32 0.03125, %v908_v1  ;;  %v1047_v53 = vmul.f32 %v3296_v41, %v3296_v41 }
 0x217   :  { %588 = vadd.xlane.f32.xlu1 %v587_v57  ;;  %v1048_v50 = vmul.f32 %v3298_v9, %v3298_v9 }
 0x22e   :  { %v3292_v25 = vpop.xlane.xlu0 %462 }
 0x230   :  { %v3294_v3 = vpop.xlane.xlu1 %465 }
 0x232   :  { %v991_v11 = vpop.xlane.xlu0 %990 }
 0x233   :  { %v1033_v12 = vmul.f32 0.03125, %v991_v11  ;;  %v3309_v11 = vld [vmem:[%s3934_s5 + $0x4] ss:$0 sm:$0xff] }
 0x234   :  { %v994_v18 = vpop.xlane.xlu1 %993 }
 0x235   :  { %v1065_v37 = vsub.f32 %v1033_v12, %v1049_v8  ;;  %v1034_v23 = vmul.f32 0.03125, %v994_v18 }
 0x236   :  { %v985_v45 = vpop.xlane.xlu0 %984 }
 0x237   :  { %v1081_v49 = vadd.f32 1e-05, %v1065_v37  ;;  %v1066_v36 = vsub.f32 %v1034_v23, %v1050_v28  ;;  %v1031_v39 = vmul.f32 0.03125, %v985_v45 }
 0x238   :  { %v988_v13 = vpop.xlane.xlu1 %987 }
 0x239   :  { %2522 = vrsqrt.f32 %v1081_v49  ;;  %v1082_v54 = vadd.f32 1e-05, %v1066_v36  ;;  %v1063_v5 = vsub.f32 %v1031_v39, %v1047_v53  ;;  %v1032_v26 = vmul.f32 0.03125, %v988_v13 }
 0x23a   :  { %v923_v20 = vpop.xlane.xlu0 %922 }
 0x23b   :  { %2524 = vrsqrt.f32 %v1082_v54  ;;  %v1079_v55 = vadd.f32 1e-05, %v1063_v5  ;;  %v1064_v7 = vsub.f32 %v1032_v26, %v1048_v50  ;;  %v3304_v0 = vmul.f32 0.03125, %v923_v20 }
 0x23c   :  { %v926_v57 = vpop.xlane.xlu1 %925  ;;  %v1133_v54 = vsub.f32 %v3008_v34, %v953_v33  ;;  %v1134_v5 = vsub.f32 %v3014_v63, %v954_v10  ;;  %v1131_v26 = vsub.f32 %v3011_v42, %v3296_v41 }
 0x23d   :  { %2526 = vrsqrt.f32 %v1079_v55  ;;  %v1080_v58 = vadd.f32 1e-05, %v1064_v7  ;;  %v3311_v8 = vmul.f32 0.03125, %v926_v57  ;;  %v1053_v28 = vmul.f32 %v3304_v0, %v3304_v0 }
 0x23e   :  { %v917_v62 = vpop.xlane.xlu0 %916 }
 0x23f   :  { %2528 = vrsqrt.f32 %v1080_v58  ;;  %v3315_v37 = vmul.f32 0.03125, %v917_v62  ;;  %v1054_v39 = vmul.f32 %v3311_v8, %v3311_v8 }
 0x240   :  { %v920_v1 = vpop.xlane.xlu1 %919 }
 0x241   :  { %v3318_v53 = vmul.f32 0.03125, %v920_v1  ;;  %v1051_v57 = vmul.f32 %v3315_v37, %v3315_v37 }
 0x242   :  { %v1003_v12 = vpop.xlane.xlu0 %1002 }
 0x243   :  { %v2523_v18 = vpop.eup %2522  ;;  %v1037_v23 = vmul.f32 0.03125, %v1003_v12  ;;  %v1052_v34 = vmul.f32 %v3318_v53, %v3318_v53 }
 0x244   :  { %v1117_v45 = vmul.f32 %v2523_v18, %v3309_v11  ;;  %v1006_v49 = vpop.xlane.xlu1 %1005 }
 0x245   :  { %v2525_v36 = vpop.eup %2524  ;;  %v1069_v50 = vsub.f32 %v1037_v23, %v1053_v28  ;;  %v1038_v13 = vmul.f32 0.03125, %v1006_v49  ;;  %v1132_v23 = vsub.f32 %v3019_v4, %v3298_v9  ;;  %v3337_v49 = vld [vmem:[%s3934_s5 + $0x5] ss:$0 sm:$0xff] }
 0x246   :  { %v1118_v20 = vmul.f32 %v2525_v36, %v3309_v11  ;;  %v997_v55 = vpop.xlane.xlu0 %996  ;;  %v1149_v12 = vmul.f32 %v1133_v54, %v1117_v45 }
 0x247   :  { %v2527_v7 = vpop.eup %2526  ;;  %v1085_v58 = vadd.f32 1e-05, %v1069_v50  ;;  %v1070_v62 = vsub.f32 %v1038_v13, %v1054_v39  ;;  %v1035_v1 = vmul.f32 0.03125, %v997_v55 }
 0x248   :  { %v1150_v18 = vmul.f32 %v1134_v5, %v1118_v20  ;;  %v1000_v33 = vpop.xlane.xlu1 %999  ;;  %v1115_v63 = vmul.f32 %v2527_v7, %v3309_v11  ;;  %v1169_v4 = vadd.f32 %v3337_v49, %v1149_v12 }
 0x249   :  { %v2529_v10 = vpop.eup %2528  ;;  %2530 = vrsqrt.f32 %v1085_v58  ;;  %v1086_v42 = vadd.f32 1e-05, %v1070_v62  ;;  %v1067_v41 = vsub.f32 %v1035_v1, %v1051_v57  ;;  %v1036_v28 = vmul.f32 0.03125, %v1000_v33 }
 0x24a   :  { %v935_v45 = vpop.xlane.xlu0 %934  ;;  %v1116_v36 = vmul.f32 %v2529_v10, %v3309_v11  ;;  %v1147_v39 = vmul.f32 %v1131_v26, %v1115_v63  ;;  %v1170_v50 = vadd.f32 %v3337_v49, %v1150_v18  ;;  %v1185_v33 = vmax.f32 %v1169_v4, 0.0 }
 0x24b   :  { %2532 = vrsqrt.f32 %v1086_v42  ;;  %v1083_v13 = vadd.f32 1e-05, %v1067_v41  ;;  %v1068_v54 = vsub.f32 %v1036_v28, %v1052_v34  ;;  %v3344_v62 = vmul.f32 0.03125, %v935_v45  ;;  %v2455_v45 = vld [vmem:[%s3932_s3 + $0x8] sm:$0xff]  }
 0x24c   :  { %v938_v5 = vpop.xlane.xlu1 %937  ;;  %v1148_v20 = vmul.f32 %v1132_v23, %v1116_v36  ;;  %v1167_v55 = vadd.f32 %v3337_v49, %v1147_v39  ;;  %v1186_v58 = vmax.f32 %v1170_v50, 0.0  ;;  %v1138_v4 = vsub.f32 %v3095_v14, %v3311_v8 }
 0x24d   :  { %2534 = vrsqrt.f32 %v1083_v13  ;;  %v1084_v9 = vadd.f32 1e-05, %v1068_v54  ;;  %v3346_v34 = vmul.f32 0.03125, %v938_v5  ;;  %v1057_v12 = vmul.f32 %v3344_v62, %v3344_v62 }
 0x24e   :  { %v929_v7 = vpop.xlane.xlu0 %928  ;;  %v1168_v57 = vadd.f32 %v3337_v49, %v1148_v20  ;;  %v1183_v1 = vmax.f32 %v1167_v55, 0.0  ;;  %v1208_v23 = vpack.c.bf16 %v1186_v58, %v1185_v33  ;;  %v1137_v55 = vsub.f32 %v3088_v29, %v3304_v0 }
 0x24f   :  { %2536 = vrsqrt.f32 %v1084_v9  ;;  %v3350_v41 = vmul.f32 0.03125, %v929_v7  ;;  %v1058_v54 = vmul.f32 %v3346_v34, %v3346_v34  ;;  %v1135_v9 = vsub.f32 %v3099_v15, %v3315_v37 }
 0x250   :  { %v932_v26 = vpop.xlane.xlu1 %931  ;;  %v1184_v18 = vmax.f32 %v1168_v57, 0.0 }
 0x251   :  { %v3355_v36 = vmul.f32 0.03125, %v932_v26  ;;  %v1055_v26 = vmul.f32 %v3350_v41, %v3350_v41 }
 0x252   :  { %v1015_v63 = vpop.xlane.xlu0 %1014  ;;  %v1207_v10 = vpack.c.bf16 %v1184_v18, %v1183_v1 }
 0x253   :  { %v2531_v42 = vpop.eup %2530  ;;  %v1041_v28 = vmul.f32 0.03125, %v1015_v63  ;;  %v1056_v29 = vmul.f32 %v3355_v36, %v3355_v36 }
 0x254   :  { %v1018_v39 = vpop.xlane.xlu1 %1017  ;;  %2303 = vmatprep.mubr.msk.bf16.mxu0 %vm107_vm0, %v1207_v10  ;;  %v1121_v50 = vmul.f32 %v2531_v42, %v3309_v11  ;;  %v1136_v42 = vsub.f32 %v3107_v35, %v3318_v53 }
 0x255   :  { %v2533_v13 = vpop.eup %2532  ;;  %v1073_v5 = vsub.f32 %v1041_v28, %v1057_v12  ;;  %v1042_v20 = vmul.f32 0.03125, %v1018_v39  ;;  %2304 = vmatmul.mubr.msk.bf16.vlgmr.msra.gmra.mrb[16].mxu0 %vm107_vm0, %v1208_v23 }
 0x256   :  { %v1009_v7 = vpop.xlane.xlu0 %1008  ;;  %v1122_v57 = vmul.f32 %v2533_v13, %v3309_v11  ;;  %2320 = vmatpush3.bf16.msra.mxu0 %v3248_v6  ;;  %v1153_v15 = vmul.f32 %v1137_v55, %v1121_v50 }
 0x257   :  { %v2535_v58 = vpop.eup %2534  ;;  %v1089_v1 = vadd.f32 1e-05, %v1073_v5  ;;  %v1074_v18 = vsub.f32 %v1042_v20, %v1058_v54  ;;  %v1039_v33 = vmul.f32 0.03125, %v1009_v7  ;;  %2321 = vmatprep.subr.bf16.mxu0 %v2455_v45 }
 0x258   :  { %v1012_v14 = vpop.xlane.xlu1 %1011  ;;  %v1119_v0 = vmul.f32 %v2535_v58, %v3309_v11  ;;  %v1154_v8 = vmul.f32 %v1138_v4, %v1122_v57  ;;  %v1173_v4 = vadd.f32 %v3337_v49, %v1153_v15 }
 0x259   :  { %v2537_v37 = vpop.eup %2536  ;;  %2538 = vrsqrt.f32 %v1089_v1  ;;  %v1090_v63 = vadd.f32 1e-05, %v1074_v18  ;;  %v1071_v6 = vsub.f32 %v1039_v33, %v1055_v26  ;;  %v1040_v10 = vmul.f32 0.03125, %v1012_v14 }
 0x25a   :  { %v947_v12 = vpop.xlane.xlu0 %946  ;;  %v1120_v28 = vmul.f32 %v2537_v37, %v3309_v11  ;;  %v1151_v23 = vmul.f32 %v1135_v9, %v1119_v0  ;;  %2322 = vmatpush3.bf16.msra.mxu0 %v2455_v45  ;;  %v1174_v54 = vadd.f32 %v3337_v49, %v1154_v8  ;;  %v1189_v1 = vmax.f32 %v1173_v4, 0.0 }
 0x25b   :  { %2540 = vrsqrt.f32 %v1090_v63  ;;  %v1087_v39 = vadd.f32 1e-05, %v1071_v6  ;;  %v1072_v13 = vsub.f32 %v1040_v10, %v1056_v29  ;;  %v3382_v53 = vmul.f32 0.03125, %v947_v12 }
 0x25c   :  { %v950_v50 = vpop.xlane.xlu1 %949  ;;  %v1152_v5 = vmul.f32 %v1136_v42, %v1120_v28  ;;  %v1171_v20 = vadd.f32 %v3337_v49, %v1151_v23  ;;  %v1190_v45 = vmax.f32 %v1174_v54, 0.0  ;;  %v1141_v23 = vsub.f32 %v3145_v59, %v3344_v62 }
 0x25d   :  { %2542 = vrsqrt.f32 %v1087_v39  ;;  %v1088_v55 = vadd.f32 1e-05, %v1072_v13  ;;  %v3384_v26 = vmul.f32 0.03125, %v950_v50  ;;  %v1061_v14 = vmul.f32 %v3382_v53, %v3382_v53 }
 0x25e   :  { %v941_v7 = vpop.xlane.xlu0 %940  ;;  %v1172_v35 = vadd.f32 %v3337_v49, %v1152_v5  ;;  %v1187_v57 = vmax.f32 %v1171_v20, 0.0  ;;  %v1210_v8 = vpack.c.bf16 %v1190_v45, %v1189_v1  ;;  %v1142_v39 = vsub.f32 %v3153_v60, %v3346_v34 }
 0x25f   :  { %2544 = vrsqrt.f32 %v1088_v55  ;;  %v3388_v0 = vmul.f32 0.03125, %v941_v7  ;;  %v1062_v42 = vmul.f32 %v3384_v26, %v3384_v26  ;;  %v1139_v13 = vsub.f32 %v3030_v19, %v3350_v41 }
 0x260   :  { %v944_v9 = vpop.xlane.xlu1 %943  ;;  %v1188_v58 = vmax.f32 %v1172_v35, 0.0 }
 0x261   :  { %v3390_v37 = vmul.f32 0.03125, %v944_v9  ;;  %v1059_v20 = vmul.f32 %v3388_v0, %v3388_v0 }
 0x262   :  { %v1027_v18 = vpop.xlane.xlu0 %1026  ;;  %v1209_v33 = vpack.c.bf16 %v1188_v58, %v1187_v57  ;;  %v3410_v57 = vmul.f32 0.03125, %v3292_v25  ;;  %v1140_v58 = vsub.f32 %v3035_v47, %v3355_v36 }
 0x263   :  { %v2539_v29 = vpop.eup %2538  ;;  %v1045_v15 = vmul.f32 0.03125, %v1027_v18  ;;  %v1060_v35 = vmul.f32 %v3390_v37, %v3390_v37 }
 0x264   :  { %v1030_v63 = vpop.xlane.xlu1 %1029  ;;  %2307 = vmatprep.mubr.msk.bf16.mxu0 %vm107_vm0, %v1209_v33  ;;  %v1125_v6 = vmul.f32 %v2539_v29, %v3309_v11 }
 0x265   :  { %v2541_v10 = vpop.eup %2540  ;;  %v1077_v12 = vsub.f32 %v1045_v15, %v1061_v14  ;;  %v1046_v28 = vmul.f32 0.03125, %v1030_v63  ;;  %2308 = vmatmul.mubr.msk.bf16.gmra.mrb[20].mxu0 %vm107_vm0, %v1210_v8 }
 0x266   :  { %v1021_v54 = vpop.xlane.xlu0 %1020  ;;  %v1126_v50 = vmul.f32 %v2541_v10, %v3309_v11  ;;  %v1157_v60 = vmul.f32 %v1141_v23, %v1125_v6  ;;  %v3418_v10 = vmul.f32 0.03125, %v3294_v3 }
 0x267   :  { %v2543_v5 = vpop.eup %2542  ;;  %v1093_v55 = vadd.f32 1e-05, %v1077_v12  ;;  %v1078_v4 = vsub.f32 %v1046_v28, %v1062_v42  ;;  %v1043_v7 = vmul.f32 0.03125, %v1021_v54  ;;  %v606_v28 = vmul.f32 %v3410_v57, %v3410_v57 }
 0x268   :  { %v1024_v59 = vpop.xlane.xlu1 %1023  ;;  %v1123_v62 = vmul.f32 %v2543_v5, %v3309_v11  ;;  %v1158_v34 = vmul.f32 %v1142_v39, %v1126_v50  ;;  %v1177_v47 = vadd.f32 %v3337_v49, %v1157_v60  ;;  %v607_v5 = vmul.f32 %v3418_v10, %v3418_v10 }
 0x269   :  { %v2545_v45 = vpop.eup %2544  ;;  %2546 = vrsqrt.f32 %v1093_v55  ;;  %v1094_v19 = vadd.f32 1e-05, %v1078_v4  ;;  %v1075_v41 = vsub.f32 %v1043_v7, %v1059_v20  ;;  %v1044_v9 = vmul.f32 0.03125, %v1024_v59 }
 0x26a   :  { %v469_v1 = vpop.xlane.xlu0 %468  ;;  %v1124_v18 = vmul.f32 %v2545_v45, %v3309_v11  ;;  %v1155_v33 = vmul.f32 %v1139_v13, %v1123_v62  ;;  %v1178_v15 = vadd.f32 %v3337_v49, %v1158_v34  ;;  %v1193_v4 = vmax.f32 %v1177_v47, 0.0 }
 0x26b   :  { %2548 = vrsqrt.f32 %v1094_v19  ;;  %v1091_v29 = vadd.f32 1e-05, %v1075_v41  ;;  %v1076_v14 = vsub.f32 %v1044_v9, %v1060_v35  ;;  %v3421_v36 = vmul.f32 0.03125, %v469_v1 }
 0x26c   :  { %v472_v8 = vpop.xlane.xlu1 %471  ;;  %v1156_v63 = vmul.f32 %v1140_v58, %v1124_v18  ;;  %v1175_v6 = vadd.f32 %v3337_v49, %v1155_v33  ;;  %v1194_v39 = vmax.f32 %v1178_v15, 0.0 }
 0x26d   :  { %2550 = vrsqrt.f32 %v1091_v29  ;;  %v1092_v25 = vadd.f32 1e-05, %v1076_v14  ;;  %v3426_v13 = vmul.f32 0.03125, %v472_v8  ;;  %v608_v7 = vmul.f32 %v3421_v36, %v3421_v36 }
 0x26e   :  { %v544_v42 = vpop.xlane.xlu0 %543  ;;  %v1176_v12 = vadd.f32 %v3337_v49, %v1156_v63  ;;  %v1191_v3 = vmax.f32 %v1175_v6, 0.0  ;;  %v1212_v19 = vpack.c.bf16 %v1194_v39, %v1193_v4  ;;  %v1146_v14 = vsub.f32 %v3044_v32, %v3384_v26 }
 0x26f   :  { %2552 = vrsqrt.f32 %v1092_v25  ;;  %v590_v23 = vmul.f32 0.03125, %v544_v42  ;;  %v609_v41 = vmul.f32 %v3426_v13, %v3426_v13  ;;  %v1145_v6 = vsub.f32 %v3038_v27, %v3382_v53 }
 0x270   :  { %v547_v54 = vpop.xlane.xlu1 %546  ;;  %v1192_v50 = vmax.f32 %v1176_v12, 0.0  ;;  %v1143_v42 = vsub.f32 %v3041_v16, %v3388_v0 }
 0x271   :  { %v622_v20 = vsub.f32 %v590_v23, %v606_v28  ;;  %v591_v55 = vmul.f32 0.03125, %v547_v54  ;;  %v1144_v54 = vsub.f32 %v3047_v17, %v3390_v37  ;;  %v691_v37 = vsub.f32 %v3062_v44, %v3418_v10 }
 0x272   :  { %v550_v35 = vpop.xlane.xlu0 %549  ;;  %v1211_v59 = vpack.c.bf16 %v1192_v50, %v1191_v3 }
 0x273   :  { %v2547_v62 = vpop.eup %2546  ;;  %v638_v60 = vadd.f32 1e-05, %v622_v20  ;;  %v623_v34 = vsub.f32 %v591_v55, %v607_v5  ;;  %v592_v45 = vmul.f32 0.03125, %v550_v35  ;;  %v3455_v55 = vld [vmem:[%s3934_s5 + $0x1] ss:$0 sm:$0xff] }
 0x274   :  { %v553_v9 = vpop.xlane.xlu1 %552  ;;  %2311 = vmatprep.mubr.msk.bf16.mxu0 %vm107_vm0, %v1211_v59  ;;  %v1129_v58 = vmul.f32 %v2547_v62, %v3309_v11 }
 0x275   :  { %v2549_v1 = vpop.eup %2548  ;;  %2554 = vrsqrt.f32 %v638_v60  ;;  %v639_v18 = vadd.f32 1e-05, %v623_v34  ;;  %v624_v33 = vsub.f32 %v592_v45, %v608_v7  ;;  %v593_v29 = vmul.f32 0.03125, %v553_v9  ;;  %2312 = vmatmul.mubr.msk.bf16.gmra.mrb[24].mxu0 %vm107_vm0, %v1212_v19 }
 0x276   :  { %v475_v15 = vpop.xlane.xlu0 %474  ;;  %v1130_v8 = vmul.f32 %v2549_v1, %v3309_v11  ;;  %v1161_v26 = vmul.f32 %v1145_v6, %v1129_v58  ;;  %v692_v60 = vsub.f32 %v3202_v21, %v3421_v36 }
 0x277   :  { %v2551_v63 = vpop.eup %2550  ;;  %2556 = vrsqrt.f32 %v639_v18  ;;  %v640_v25 = vadd.f32 1e-05, %v624_v33  ;;  %v625_v47 = vsub.f32 %v593_v29, %v609_v41  ;;  %v3448_v50 = vmul.f32 0.03125, %v475_v15 }
 0x278   :  { %v478_v12 = vpop.xlane.xlu1 %477  ;;  %v1127_v28 = vmul.f32 %v2551_v63, %v3309_v11  ;;  %v1162_v23 = vmul.f32 %v1146_v14, %v1130_v8  ;;  %v1181_v17 = vadd.f32 %v3337_v49, %v1161_v26 }
 0x279   :  { %v2553_v39 = vpop.eup %2552  ;;  %2558 = vrsqrt.f32 %v640_v25  ;;  %v641_v32 = vadd.f32 1e-05, %v625_v47  ;;  %v3457_v4 = vmul.f32 0.03125, %v478_v12  ;;  %v610_v34 = vmul.f32 %v3448_v50, %v3448_v50 }
 0x27a   :  { %v481_v3 = vpop.xlane.xlu0 %480  ;;  %v1128_v27 = vmul.f32 %v2553_v39, %v3309_v11  ;;  %v1159_v53 = vmul.f32 %v1143_v42, %v1127_v28  ;;  %v1182_v16 = vadd.f32 %v3337_v49, %v1162_v23  ;;  %v690_v11 = vsub.f32 %v3057_v38, %v3410_v57 }
 0x27b   :  { %2560 = vrsqrt.f32 %v641_v32  ;;  %v3464_v7 = vmul.f32 0.03125, %v481_v3  ;;  %v611_v21 = vmul.f32 %v3457_v4, %v3457_v4  ;;  %v1197_v1 = vmax.f32 %v1181_v17, 0.0 }
 0x27c   :  { %v484_v0 = vpop.xlane.xlu1 %483  ;;  %v1160_v5 = vmul.f32 %v1144_v54, %v1128_v27  ;;  %v1179_v20 = vadd.f32 %v3337_v49, %v1159_v53  ;;  %v1198_v19 = vmax.f32 %v1182_v16, 0.0  ;;  %v693_v27 = vsub.f32 %v3207_v31, %v3426_v13 }
 0x27d   :  { %v3471_v41 = vmul.f32 0.03125, %v484_v0  ;;  %v612_v18 = vmul.f32 %v3464_v7, %v3464_v7 }
 0x27e   :  { %v556_v35 = vpop.xlane.xlu0 %555  ;;  %v1180_v59 = vadd.f32 %v3337_v49, %v1160_v5  ;;  %v1195_v57 = vmax.f32 %v1179_v20, 0.0  ;;  %v3477_v49 = vld [vmem:[%s3934_s5 + $0x2] ss:$0 sm:$0xff]  ;;  %v1214_v47 = vpack.c.bf16 %v1198_v19, %v1197_v1 }
 0x27f   :  { %v2555_v62 = vpop.eup %2554  ;;  %v594_v45 = vmul.f32 0.03125, %v556_v35  ;;  %v613_v12 = vmul.f32 %v3471_v41, %v3471_v41 }
 0x280   :  { %v559_v38 = vpop.xlane.xlu1 %558  ;;  %v1196_v9 = vmax.f32 %v1180_v59, 0.0  ;;  %v674_v44 = vmul.f32 %v2555_v62, %v3455_v55 }
 0x281   :  { %v2557_v10 = vpop.eup %2556  ;;  %v626_v36 = vsub.f32 %v594_v45, %v610_v34  ;;  %v595_v58 = vmul.f32 0.03125, %v559_v38 }
 0x282   :  { %v562_v33 = vpop.xlane.xlu0 %561  ;;  %v1213_v29 = vpack.c.bf16 %v1196_v9, %v1195_v57  ;;  %v675_v14 = vmul.f32 %v2557_v10, %v3455_v55  ;;  %v706_v15 = vmul.f32 %v690_v11, %v674_v44 }
 0x283   :  { %v2559_v8 = vpop.eup %2558  ;;  %v642_v63 = vadd.f32 1e-05, %v626_v36  ;;  %v627_v6 = vsub.f32 %v595_v58, %v611_v21  ;;  %v596_v25 = vmul.f32 0.03125, %v562_v33 }
 0x284   :  { %v676_v42 = vmul.f32 %v2559_v8, %v3455_v55  ;;  %v565_v28 = vpop.xlane.xlu1 %564  ;;  %2315 = vmatprep.mubr.msk.bf16.mxu0 %vm107_vm0, %v1213_v29  ;;  %v707_v23 = vmul.f32 %v691_v37, %v675_v14  ;;  %v726_v39 = vadd.f32 %v3477_v49, %v706_v15 }
 0x285   :  { %v2561_v32 = vpop.eup %2560  ;;  %2562 = vrsqrt.f32 %v642_v63  ;;  %v643_v26 = vadd.f32 1e-05, %v627_v6  ;;  %v628_v54 = vsub.f32 %v596_v25, %v612_v18  ;;  %v597_v3 = vmul.f32 0.03125, %v565_v28  ;;  %2316 = vmatmul.mubr.msk.bf16.gmra.mrb[28].mxu0 %vm107_vm0, %v1214_v47 }
 0x286   :  { %v708_v53 = vmul.f32 %v692_v60, %v676_v42  ;;  %v677_v16 = vmul.f32 %v2561_v32, %v3455_v55  ;;  %v487_v0 = vpop.xlane.xlu0 %486  ;;  %v727_v5 = vadd.f32 %v3477_v49, %v707_v23  ;;  %v742_v59 = vmax.f32 %v726_v39, 0.0 }
 0x287   :  { %2564 = vrsqrt.f32 %v643_v26  ;;  %v644_v20 = vadd.f32 1e-05, %v628_v54  ;;  %v629_v17 = vsub.f32 %v597_v3, %v613_v12  ;;  %v3496_v60 = vmul.f32 0.03125, %v487_v0 }
 0x288   :  { %v728_v11 = vadd.f32 %v3477_v49, %v708_v53  ;;  %v709_v37 = vmul.f32 %v693_v27, %v677_v16  ;;  %v490_v35 = vpop.xlane.xlu1 %489  ;;  %v743_v62 = vmax.f32 %v727_v5, 0.0  ;;  %v694_v18 = vsub.f32 %v3082_v24, %v3448_v50 }
 0x289   :  { %2566 = vrsqrt.f32 %v644_v20  ;;  %v645_v34 = vadd.f32 1e-05, %v629_v17  ;;  %v3499_v9 = vmul.f32 0.03125, %v490_v35  ;;  %v614_v36 = vmul.f32 %v3496_v60, %v3496_v60 }
 0x28a   :  { %v729_v45 = vadd.f32 %v3477_v49, %v709_v37  ;;  %v493_v31 = vpop.xlane.xlu0 %492  ;;  %v1199_v13 = vpack.c.bf16 %v743_v62, %v742_v59  ;;  %v744_v19 = vmax.f32 %v728_v11, 0.0  ;;  %v695_v25 = vsub.f32 %v3092_v61, %v3457_v4 }
 0x28b   :  { %2568 = vrsqrt.f32 %v645_v34  ;;  %v3503_v58 = vmul.f32 0.03125, %v493_v31  ;;  %v615_v8 = vmul.f32 %v3499_v9, %v3499_v9  ;;  %v696_v47 = vsub.f32 %v3076_v51, %v3464_v7 }
 0x28c   :  { %v745_v38 = vmax.f32 %v729_v45, 0.0  ;;  %v496_v57 = vpop.xlane.xlu1 %495  ;;  %2323 = vmatprep.mubr.msk.bf16.mxu0 %vm107_vm0, %v1199_v13  ;;  %v697_v16 = vsub.f32 %v3085_v56, %v3471_v41 }
 0x28d   :  { %v3507_v33 = vmul.f32 0.03125, %v496_v57  ;;  %v616_v28 = vmul.f32 %v3503_v58, %v3503_v58 }
 0x28e   :  { %v568_v44 = vpop.xlane.xlu0 %567  ;;  %v1200_v10 = vpack.c.bf16 %v745_v38, %v744_v19 }
 0x28f   :  { %v2563_v21 = vpop.eup %2562  ;;  %v598_v1 = vmul.f32 0.03125, %v568_v44  ;;  %v617_v26 = vmul.f32 %v3507_v33, %v3507_v33 }
 0x290   :  { %v571_v29 = vpop.xlane.xlu1 %570  ;;  %2324 = vmatmul.mubr.msk.bf16.vlgmr.msra.gmra.mrb[16].mxu0 %vm107_vm0, %v1200_v10  ;;  %v678_v14 = vmul.f32 %v2563_v21, %v3455_v55 }
 0x291   :  { %v2565_v15 = vpop.eup %2564  ;;  %v630_v63 = vsub.f32 %v598_v1, %v614_v36  ;;  %v599_v6 = vmul.f32 0.03125, %v571_v29 }
 0x292   :  { %v574_v24 = vpop.xlane.xlu0 %573  ;;  %v679_v50 = vmul.f32 %v2565_v15, %v3455_v55  ;;  %v710_v42 = vmul.f32 %v694_v18, %v678_v14  ;;  %v698_v15 = vsub.f32 %v3112_v2, %v3496_v60 }
 0x293   :  { %v2567_v12 = vpop.eup %2566  ;;  %v646_v23 = vadd.f32 1e-05, %v630_v63  ;;  %v631_v39 = vsub.f32 %v599_v6, %v615_v8  ;;  %v600_v32 = vmul.f32 0.03125, %v574_v24 }
 0x294   :  { %v577_v54 = vpop.xlane.xlu1 %576  ;;  %v711_v3 = vmul.f32 %v695_v25, %v679_v50  ;;  %v730_v61 = vadd.f32 %v3477_v49, %v710_v42  ;;  %v680_v51 = vmul.f32 %v2567_v12, %v3455_v55  ;;  %v699_v42 = vsub.f32 %v3122_v40, %v3499_v9 }
 0x295   :  { %v2569_v4 = vpop.eup %2568  ;;  %2570 = vrsqrt.f32 %v646_v23  ;;  %v647_v7 = vadd.f32 1e-05, %v631_v39  ;;  %v632_v27 = vsub.f32 %v600_v32, %v616_v28  ;;  %v601_v53 = vmul.f32 0.03125, %v577_v54 }
 0x296   :  { %v499_v0 = vpop.xlane.xlu0 %498  ;;  %v731_v5 = vadd.f32 %v3477_v49, %v711_v3  ;;  %v681_v20 = vmul.f32 %v2569_v4, %v3455_v55  ;;  %v712_v17 = vmul.f32 %v696_v47, %v680_v51  ;;  %v746_v59 = vmax.f32 %v730_v61, 0.0 }
 0x297   :  { %2572 = vrsqrt.f32 %v647_v7  ;;  %v648_v11 = vadd.f32 1e-05, %v632_v27  ;;  %v633_v37 = vsub.f32 %v601_v53, %v617_v26  ;;  %v3530_v41 = vmul.f32 0.03125, %v499_v0 }
 0x298   :  { %v502_v35 = vpop.xlane.xlu1 %501  ;;  %v747_v62 = vmax.f32 %v731_v5, 0.0  ;;  %v713_v34 = vmul.f32 %v697_v16, %v681_v20  ;;  %v732_v45 = vadd.f32 %v3477_v49, %v712_v17  ;;  %v700_v12 = vsub.f32 %v3104_v30, %v3503_v58 }
 0x299   :  { %2574 = vrsqrt.f32 %v648_v11  ;;  %v649_v31 = vadd.f32 1e-05, %v633_v37  ;;  %v3533_v10 = vmul.f32 0.03125, %v502_v35  ;;  %v618_v18 = vmul.f32 %v3530_v41, %v3530_v41 }
 0x29a   :  { %v505_v13 = vpop.xlane.xlu0 %504  ;;  %v1201_v19 = vpack.c.bf16 %v747_v62, %v746_v59  ;;  %v733_v56 = vadd.f32 %v3477_v49, %v713_v34  ;;  %v748_v57 = vmax.f32 %v732_v45, 0.0  ;;  %v701_v27 = vsub.f32 %v3115_v43, %v3507_v33 }
 0x29b   :  { %2576 = vrsqrt.f32 %v649_v31  ;;  %v3537_v29 = vmul.f32 0.03125, %v505_v13  ;;  %v619_v47 = vmul.f32 %v3533_v10, %v3533_v10  ;;  %v702_v13 = vsub.f32 %v3138_v52, %v3530_v41 }
 0x29c   :  { %v508_v38 = vpop.xlane.xlu1 %507  ;;  %2327 = vmatprep.mubr.msk.bf16.mxu0 %vm107_vm0, %v1201_v19  ;;  %v749_v44 = vmax.f32 %v733_v56, 0.0 }
 0x29d   :  { %v3541_v8 = vmul.f32 0.03125, %v508_v38  ;;  %v620_v39 = vmul.f32 %v3537_v29, %v3537_v29  ;;  %v703_v38 = vsub.f32 %v3149_v48, %v3533_v10 }
 0x29e   :  { %v580_v21 = vpop.xlane.xlu0 %579  ;;  %v1202_v36 = vpack.c.bf16 %v749_v44, %v748_v57 }
 0x29f   :  { %v2571_v1 = vpop.eup %2570  ;;  %v602_v14 = vmul.f32 0.03125, %v580_v21  ;;  %v621_v3 = vmul.f32 %v3541_v8, %v3541_v8 }
 0x2a0   :  { %v583_v63 = vpop.xlane.xlu1 %582  ;;  %2328 = vmatmul.mubr.msk.bf16.gmra.mrb[20].mxu0 %vm107_vm0, %v1202_v36  ;;  %v682_v6 = vmul.f32 %v2571_v1, %v3455_v55  ;;  %v704_v36 = vsub.f32 %v3132_v46, %v3537_v29 }
 0x2a1   :  { %v2573_v25 = vpop.eup %2572  ;;  %v634_v24 = vsub.f32 %v602_v14, %v618_v18  ;;  %v603_v50 = vmul.f32 0.03125, %v583_v63  ;;  %v705_v14 = vsub.f32 %v3141_v22, %v3541_v8  ;;  %v3587_v22 = vld [vmem:[%s3934_s5 + $0x6] ss:$0 sm:$0xff] }
 0x2a2   :  { %v586_v2 = vpop.xlane.xlu0 %585  ;;  %v683_v60 = vmul.f32 %v2573_v25, %v3455_v55  ;;  %v714_v28 = vmul.f32 %v698_v15, %v682_v6 }
 0x2a3   :  { %v2575_v23 = vpop.eup %2574  ;;  %v650_v32 = vadd.f32 1e-05, %v634_v24  ;;  %v635_v26 = vsub.f32 %v603_v50, %v619_v47  ;;  %v604_v54 = vmul.f32 0.03125, %v586_v2 }
 0x2a4   :  { %v589_v61 = vpop.xlane.xlu1 %588  ;;  %v715_v51 = vmul.f32 %v699_v42, %v683_v60  ;;  %v734_v40 = vadd.f32 %v3477_v49, %v714_v28  ;;  %v684_v30 = vmul.f32 %v2575_v23, %v3455_v55 }
 0x2a5   :  { %v2577_v9 = vpop.eup %2576  ;;  %2578 = vrsqrt.f32 %v650_v32  ;;  %v651_v58 = vadd.f32 1e-05, %v635_v26  ;;  %v636_v4 = vsub.f32 %v604_v54, %v620_v39  ;;  %v605_v7 = vmul.f32 0.03125, %v589_v61 }
 0x2a6   :  { %v735_v53 = vadd.f32 %v3477_v49, %v715_v51  ;;  %v685_v16 = vmul.f32 %v2577_v9, %v3455_v55  ;;  %v716_v0 = vmul.f32 %v700_v12, %v684_v30  ;;  %v750_v17 = vmax.f32 %v734_v40, 0.0 }
 0x2a7   :  { %2580 = vrsqrt.f32 %v651_v58  ;;  %v652_v5 = vadd.f32 1e-05, %v636_v4  ;;  %v637_v20 = vsub.f32 %v605_v7, %v621_v3 }
 0x2a8   :  { %v751_v11 = vmax.f32 %v735_v53, 0.0  ;;  %v717_v37 = vmul.f32 %v701_v27, %v685_v16  ;;  %v736_v35 = vadd.f32 %v3477_v49, %v716_v0 }
 0x2a9   :  { %2582 = vrsqrt.f32 %v652_v5  ;;  %v653_v59 = vadd.f32 1e-05, %v637_v20 }
 0x2aa   :  { %v1203_v62 = vpack.c.bf16 %v751_v11, %v750_v17  ;;  %v737_v34 = vadd.f32 %v3477_v49, %v717_v37  ;;  %v752_v43 = vmax.f32 %v736_v35, 0.0 }
 0x2ab   :  { %2584 = vrsqrt.f32 %v653_v59 }
 0x2ac   :  { %2331 = vmatprep.mubr.msk.bf16.mxu0 %vm107_vm0, %v1203_v62  ;;  %v753_v33 = vmax.f32 %v737_v34, 0.0 }
 0x2ae   :  { %v1204_v45 = vpack.c.bf16 %v753_v33, %v752_v43 }
 0x2af   :  { %v2579_v31 = vpop.eup %2578 }
 0x2b0   :  { %2332 = vmatmul.mubr.msk.bf16.gmra.mrb[24].mxu0 %vm107_vm0, %v1204_v45  ;;  %v686_v19 = vmul.f32 %v2579_v31, %v3455_v55 }
 0x2b1   :  { %v2581_v56 = vpop.eup %2580 }
 0x2b2   :  { %v687_v57 = vmul.f32 %v2581_v56, %v3455_v55  ;;  %v718_v44 = vmul.f32 %v702_v13, %v686_v19  ;;  %v2456_v56 = vld [vmem:[%s3933_s4] sm:$0xff]  }
 0x2b3   :  { %v2583_v21 = vpop.eup %2582  ;;  %2339 = vmatprep.subr.bf16.mxu1 %v2456_v56 }
 0x2b4   :  { %v719_v1 = vmul.f32 %v703_v38, %v687_v57  ;;  %v738_v18 = vadd.f32 %v3477_v49, %v718_v44  ;;  %v688_v52 = vmul.f32 %v2583_v21, %v3455_v55  ;;  %2340 = vmatpush3.bf16.msra.mxu1 %v2456_v56 }
 0x2b5   :  { %v2585_v41 = vpop.eup %2584 }
 0x2b6   :  { %v739_v15 = vadd.f32 %v3477_v49, %v719_v1  ;;  %v689_v48 = vmul.f32 %v2585_v41, %v3455_v55  ;;  %v720_v10 = vmul.f32 %v704_v36, %v688_v52  ;;  %v754_v63 = vmax.f32 %v738_v18, 0.0 }
 0x2b8   :  { %v755_v6 = vmax.f32 %v739_v15, 0.0  ;;  %v721_v25 = vmul.f32 %v705_v14, %v689_v48  ;;  %v740_v47 = vadd.f32 %v3477_v49, %v720_v10 }
 0x2ba   :  { %v1205_v46 = vpack.c.bf16 %v755_v6, %v754_v63  ;;  %v741_v29 = vadd.f32 %v3477_v49, %v721_v25  ;;  %v756_v24 = vmax.f32 %v740_v47, 0.0 }
 0x2bc   :  { %2335 = vmatprep.mubr.msk.bf16.mxu0 %vm107_vm0, %v1205_v46  ;;  %v757_v50 = vmax.f32 %v741_v29, 0.0 }
 0x2be   :  { %v1206_v42 = vpack.c.bf16 %v757_v50, %v756_v24 }
 0x2c0   :  { %2336 = vmatmul.mubr.msk.bf16.gmra.mrb[28].mxu0 %vm107_vm0, %v1206_v42 }
 0x363   :  { %v2325_v55 = vpop.f32.mrb[16].mxu0 }
 0x364   :  { %v3590_v8 = vadd.f32 %v2325_v55, %v3587_v22  ;;  %v1418_v12 = vpop.f32.mrb[17].mxu0 }
 0x365   :  { %v2326_v2 = vpop.f32.mrb[18].mxu0  ;;  %v3593_v49 = vadd.f32 %v3587_v22, %v1418_v12 }
 0x366   :  { %v3596_v60 = vadd.f32 %v2326_v2, %v3587_v22  ;;  %v1421_v28 = vpop.f32.mrb[19].mxu0  ;;  %v1507_v23 = vsel %vm107_vm0, %v3590_v8, 0.0  ;;  %v1567_v40 = vmul.f32 %v3590_v8, %v3590_v8 }
 0x367   :  { %1508 = vadd.xlane.f32.xlu0 %v1507_v23  ;;  %v3601_v39 = vadd.f32 %v3587_v22, %v1421_v28  ;;  %v1501_v26 = vsel %vm107_vm0, %v3593_v49, 0.0  ;;  %v1565_v54 = vmul.f32 %v3593_v49, %v3593_v49 }
 0x368   :  { %v1510_v32 = vsel %vm107_vm0, %v3596_v60, 0.0  ;;  %v1568_v9 = vmul.f32 %v3596_v60, %v3596_v60  ;;  %v1587_v58 = vsel %vm107_vm0, %v1567_v40, 0.0 }
 0x369   :  { %1511 = vadd.xlane.f32.xlu1 %v1510_v32  ;;  %v1504_v3 = vsel %vm107_vm0, %v3601_v39, 0.0  ;;  %v1566_v61 = vmul.f32 %v3601_v39, %v3601_v39  ;;  %v1581_v51 = vsel %vm107_vm0, %v1565_v54, 0.0 }
 0x36a   :  { %v1590_v53 = vsel %vm107_vm0, %v1568_v9, 0.0 }
 0x36b   :  { %1502 = vadd.xlane.f32.xlu0 %v1501_v26  ;;  %v1584_v30 = vsel %vm107_vm0, %v1566_v61, 0.0 }
 0x36d   :  { %1505 = vadd.xlane.f32.xlu1 %v1504_v3  ;;  %v2457_v3 = vld [vmem:[%s3933_s4 + $0x8] sm:$0xff]  }
 0x36e   :  { %2341 = vmatprep.subr.bf16.mxu1 %v2457_v3 }
 0x36f   :  { %1582 = vadd.xlane.f32.xlu0 %v1581_v51  ;;  %2342 = vmatpush3.bf16.msra.mxu1 %v2457_v3 }
 0x371   :  { %1585 = vadd.xlane.f32.xlu1 %v1584_v30 }
 0x373   :  { %1588 = vadd.xlane.f32.xlu0 %v1587_v58  ;;  %v2329_v4 = vpop.f32.mrb[20].mxu0 }
 0x374   :  { %v3621_v7 = vadd.f32 %v2329_v4, %v3587_v22  ;;  %v1434_v27 = vpop.f32.mrb[21].mxu0 }
 0x375   :  { %1591 = vadd.xlane.f32.xlu1 %v1590_v53  ;;  %v2330_v16 = vpop.f32.mrb[22].mxu0  ;;  %v3625_v0 = vadd.f32 %v3587_v22, %v1434_v27 }
 0x376   :  { %v3628_v5 = vadd.f32 %v2330_v16, %v3587_v22  ;;  %v1437_v20 = vpop.f32.mrb[23].mxu0  ;;  %v1519_v17 = vsel %vm107_vm0, %v3621_v7, 0.0  ;;  %v1571_v33 = vmul.f32 %v3621_v7, %v3621_v7 }
 0x377   :  { %1520 = vadd.xlane.f32.xlu0 %v1519_v17  ;;  %v3633_v11 = vadd.f32 %v3587_v22, %v1437_v20  ;;  %v1513_v35 = vsel %vm107_vm0, %v3625_v0, 0.0  ;;  %v1569_v59 = vmul.f32 %v3625_v0, %v3625_v0 }
 0x378   :  { %v1522_v37 = vsel %vm107_vm0, %v3628_v5, 0.0  ;;  %v1572_v31 = vmul.f32 %v3628_v5, %v3628_v5  ;;  %v1599_v13 = vsel %vm107_vm0, %v1571_v33, 0.0 }
 0x379   :  { %1523 = vadd.xlane.f32.xlu1 %v1522_v37  ;;  %v1516_v62 = vsel %vm107_vm0, %v3633_v11, 0.0  ;;  %v1570_v34 = vmul.f32 %v3633_v11, %v3633_v11  ;;  %v1593_v43 = vsel %vm107_vm0, %v1569_v59, 0.0 }
 0x37a   :  { %v1602_v44 = vsel %vm107_vm0, %v1572_v31, 0.0 }
 0x37b   :  { %1514 = vadd.xlane.f32.xlu0 %v1513_v35  ;;  %v1596_v45 = vsel %vm107_vm0, %v1570_v34, 0.0 }
 0x37d   :  { %1517 = vadd.xlane.f32.xlu1 %v1516_v62 }
 0x37f   :  { %1594 = vadd.xlane.f32.xlu0 %v1593_v43 }
 0x381   :  { %1597 = vadd.xlane.f32.xlu1 %v1596_v45 }
 0x383   :  { %1600 = vadd.xlane.f32.xlu0 %v1599_v13  ;;  %v2333_v19 = vpop.f32.mrb[24].mxu0 }
 0x384   :  { %v3656_v38 = vadd.f32 %v2333_v19, %v3587_v22  ;;  %v1450_v57 = vpop.f32.mrb[25].mxu0 }
 0x385   :  { %1603 = vadd.xlane.f32.xlu1 %v1602_v44  ;;  %v2334_v21 = vpop.f32.mrb[26].mxu0  ;;  %v3660_v36 = vadd.f32 %v3587_v22, %v1450_v57 }
 0x386   :  { %v3663_v1 = vadd.f32 %v2334_v21, %v3587_v22  ;;  %v1453_v18 = vpop.f32.mrb[27].mxu0  ;;  %v1531_v52 = vsel %vm107_vm0, %v3656_v38, 0.0  ;;  %v1575_v25 = vmul.f32 %v3656_v38, %v3656_v38 }
 0x387   :  { %1532 = vadd.xlane.f32.xlu0 %v1531_v52  ;;  %v3668_v41 = vadd.f32 %v3587_v22, %v1453_v18  ;;  %v1525_v15 = vsel %vm107_vm0, %v3660_v36, 0.0  ;;  %v1573_v48 = vmul.f32 %v3660_v36, %v3660_v36 }
 0x388   :  { %v1534_v14 = vsel %vm107_vm0, %v3663_v1, 0.0  ;;  %v1576_v46 = vmul.f32 %v3663_v1, %v3663_v1  ;;  %v1611_v29 = vsel %vm107_vm0, %v1575_v25, 0.0 }
 0x389   :  { %1535 = vadd.xlane.f32.xlu1 %v1534_v14  ;;  %v1528_v10 = vsel %vm107_vm0, %v3668_v41, 0.0  ;;  %v1574_v63 = vmul.f32 %v3668_v41, %v3668_v41  ;;  %v1605_v6 = vsel %vm107_vm0, %v1573_v48, 0.0 }
 0x38a   :  { %v1614_v55 = vsel %vm107_vm0, %v1576_v46, 0.0 }
 0x38b   :  { %1526 = vadd.xlane.f32.xlu0 %v1525_v15  ;;  %v1608_v47 = vsel %vm107_vm0, %v1574_v63, 0.0 }
 0x38d   :  { %1529 = vadd.xlane.f32.xlu1 %v1528_v10 }
 0x38f   :  { %1606 = vadd.xlane.f32.xlu0 %v1605_v6 }
 0x391   :  { %1609 = vadd.xlane.f32.xlu1 %v1608_v47 }
 0x393   :  { %1612 = vadd.xlane.f32.xlu0 %v1611_v29  ;;  %v2337_v24 = vpop.f32.mrb[28].mxu0 }
 0x394   :  { %v3688_v50 = vadd.f32 %v2337_v24, %v3587_v22  ;;  %v1466_v42 = vpop.f32.mrb[29].mxu0 }
 0x395   :  { %1615 = vadd.xlane.f32.xlu1 %v1614_v55  ;;  %v2338_v12 = vpop.f32.mrb[30].mxu0  ;;  %v3692_v2 = vadd.f32 %v3587_v22, %v1466_v42 }
 0x396   :  { %v3695_v28 = vadd.f32 %v2338_v12, %v3587_v22  ;;  %v1469_v23 = vpop.f32.mrb[31].mxu0  ;;  %v1543_v32 = vsel %vm107_vm0, %v3688_v50, 0.0  ;;  %v1579_v9 = vmul.f32 %v3688_v50, %v3688_v50  ;;  %v3736_v12 = vld [vmem:[%s3934_s5 + $0x7] ss:$0 sm:$0xff] }
 0x397   :  { %1544 = vadd.xlane.f32.xlu0 %v1543_v32  ;;  %v3700_v26 = vadd.f32 %v3587_v22, %v1469_v23  ;;  %v1537_v61 = vsel %vm107_vm0, %v3692_v2, 0.0  ;;  %v1577_v51 = vmul.f32 %v3692_v2, %v3692_v2 }
 0x398   :  { %v1546_v54 = vsel %vm107_vm0, %v3695_v28, 0.0  ;;  %v1580_v4 = vmul.f32 %v3695_v28, %v3695_v28  ;;  %v1623_v27 = vsel %vm107_vm0, %v1579_v9, 0.0 }
 0x399   :  { %1547 = vadd.xlane.f32.xlu1 %v1546_v54  ;;  %v1540_v22 = vsel %vm107_vm0, %v3700_v26, 0.0  ;;  %v1578_v40 = vmul.f32 %v3700_v26, %v3700_v26  ;;  %v1617_v30 = vsel %vm107_vm0, %v1577_v51, 0.0 }
 0x39a   :  { %v1626_v53 = vsel %vm107_vm0, %v1580_v4, 0.0  ;;  %v3751_v4 = vld [vmem:[%s3934_s5 + $0x8] ss:$0 sm:$0xff] }
 0x39b   :  { %1538 = vadd.xlane.f32.xlu0 %v1537_v61  ;;  %v1620_v58 = vsel %vm107_vm0, %v1578_v40, 0.0 }
 0x39d   :  { %1541 = vadd.xlane.f32.xlu1 %v1540_v22 }
 0x39f   :  { %1618 = vadd.xlane.f32.xlu0 %v1617_v30 }
 0x3a1   :  { %1621 = vadd.xlane.f32.xlu1 %v1620_v58 }
 0x3a3   :  { %1624 = vadd.xlane.f32.xlu0 %v1623_v27 }
 0x3a5   :  { %1627 = vadd.xlane.f32.xlu1 %v1626_v53 }
 0x3f4   :  { %v1509_v16 = vpop.xlane.xlu0 %1508 }
 0x3f5   :  { %v3723_v34 = vmul.f32 0.03125, %v1509_v16 }
 0x3f6   :  { %v1512_v20 = vpop.xlane.xlu1 %1511 }
 0x3f7   :  { %v3725_v45 = vmul.f32 0.03125, %v1512_v20  ;;  %v1647_v44 = vmul.f32 %v3723_v34, %v3723_v34  ;;  %v1731_v20 = vsub.f32 %v3590_v8, %v3723_v34 }
 0x3f8   :  { %v1503_v17 = vpop.xlane.xlu0 %1502 }
 0x3f9   :  { %v1549_v37 = vmul.f32 0.03125, %v1503_v17  ;;  %v1648_v14 = vmul.f32 %v3725_v45, %v3725_v45 }
 0x3fa   :  { %v1506_v35 = vpop.xlane.xlu1 %1505 }
 0x3fb   :  { %v1550_v59 = vmul.f32 0.03125, %v1506_v35  ;;  %v1645_v43 = vmul.f32 %v1549_v37, %v1549_v37  ;;  %v1729_v22 = vsub.f32 %v3593_v49, %v1549_v37 }
 0x3fc   :  { %v1583_v62 = vpop.xlane.xlu0 %1582 }
 0x3fd   :  { %v1629_v33 = vmul.f32 0.03125, %v1583_v62  ;;  %v1646_v13 = vmul.f32 %v1550_v59, %v1550_v59  ;;  %v1730_v49 = vsub.f32 %v3601_v39, %v1550_v59 }
 0x3fe   :  { %v1586_v31 = vpop.xlane.xlu1 %1585 }
 0x3ff   :  { %v1661_v19 = vsub.f32 %v1629_v33, %v1645_v43  ;;  %v1630_v56 = vmul.f32 0.03125, %v1586_v31 }
 0x400   :  { %v1589_v57 = vpop.xlane.xlu0 %1588 }
 0x401   :  { %v1677_v21 = vadd.f32 1e-05, %v1661_v19  ;;  %v1662_v18 = vsub.f32 %v1630_v56, %v1646_v13  ;;  %v1631_v52 = vmul.f32 0.03125, %v1589_v57 }
 0x402   :  { %v1592_v15 = vpop.xlane.xlu1 %1591 }
 0x403   :  { %2586 = vrsqrt.f32 %v1677_v21  ;;  %v1678_v48 = vadd.f32 1e-05, %v1662_v18  ;;  %v1663_v10 = vsub.f32 %v1631_v52, %v1647_v44  ;;  %v1632_v63 = vmul.f32 0.03125, %v1592_v15 }
 0x404   :  { %v1521_v6 = vpop.xlane.xlu0 %1520  ;;  %v1732_v18 = vsub.f32 %v3596_v60, %v3725_v45 }
 0x405   :  { %2588 = vrsqrt.f32 %v1678_v48  ;;  %v1679_v25 = vadd.f32 1e-05, %v1663_v10  ;;  %v1664_v47 = vsub.f32 %v1632_v63, %v1648_v14  ;;  %v3740_v3 = vmul.f32 0.03125, %v1521_v6 }
 0x406   :  { %v1524_v46 = vpop.xlane.xlu1 %1523 }
 0x407   :  { %2590 = vrsqrt.f32 %v1679_v25  ;;  %v1680_v29 = vadd.f32 1e-05, %v1664_v47  ;;  %v3745_v40 = vmul.f32 0.03125, %v1524_v46  ;;  %v1651_v43 = vmul.f32 %v3740_v3, %v3740_v3 }
 0x408   :  { %v1515_v24 = vpop.xlane.xlu0 %1514 }
 0x409   :  { %2592 = vrsqrt.f32 %v1680_v29  ;;  %v3731_v42 = vmul.f32 0.03125, %v1515_v24  ;;  %v1652_v56 = vmul.f32 %v3745_v40, %v3745_v40 }
 0x40a   :  { %v1518_v55 = vpop.xlane.xlu1 %1517 }
 0x40b   :  { %v3738_v23 = vmul.f32 0.03125, %v1518_v55  ;;  %v1649_v61 = vmul.f32 %v3731_v42, %v3731_v42 }
 0x40c   :  { %v1595_v32 = vpop.xlane.xlu0 %1594 }
 0x40d   :  { %v2587_v54 = vpop.eup %2586  ;;  %v1633_v51 = vmul.f32 0.03125, %v1595_v32  ;;  %v1650_v27 = vmul.f32 %v3738_v23, %v3738_v23 }
 0x40e   :  { %v1598_v30 = vpop.xlane.xlu1 %1597  ;;  %v1713_v9 = vmul.f32 %v2587_v54, %v3736_v12 }
 0x40f   :  { %v2589_v58 = vpop.eup %2588  ;;  %v1665_v53 = vsub.f32 %v1633_v51, %v1649_v61  ;;  %v1634_v16 = vmul.f32 0.03125, %v1598_v30 }
 0x410   :  { %v1601_v17 = vpop.xlane.xlu0 %1600  ;;  %v1714_v37 = vmul.f32 %v2589_v58, %v3736_v12  ;;  %v1745_v35 = vmul.f32 %v1729_v22, %v1713_v9 }
 0x411   :  { %v2591_v62 = vpop.eup %2590  ;;  %v1681_v33 = vadd.f32 1e-05, %v1665_v53  ;;  %v1666_v31 = vsub.f32 %v1634_v16, %v1650_v27  ;;  %v1635_v13 = vmul.f32 0.03125, %v1601_v17 }
 0x412   :  { %v1715_v19 = vmul.f32 %v2591_v62, %v3736_v12  ;;  %v1604_v57 = vpop.xlane.xlu1 %1603  ;;  %v1746_v8 = vmul.f32 %v1730_v49, %v1714_v37  ;;  %v1765_v39 = vadd.f32 %v3751_v4, %v1745_v35 }
 0x413   :  { %v2593_v59 = vpop.eup %2592  ;;  %2594 = vrsqrt.f32 %v1681_v33  ;;  %v1682_v34 = vadd.f32 1e-05, %v1666_v31  ;;  %v1667_v44 = vsub.f32 %v1635_v13, %v1651_v43  ;;  %v1636_v21 = vmul.f32 0.03125, %v1604_v57 }
 0x414   :  { %v1747_v52 = vmul.f32 %v1731_v20, %v1715_v19  ;;  %v1716_v14 = vmul.f32 %v2593_v59, %v3736_v12  ;;  %v1533_v15 = vpop.xlane.xlu0 %1532  ;;  %v1766_v48 = vadd.f32 %v3751_v4, %v1746_v8  ;;  %v1781_v46 = vmax.f32 %v1765_v39, 0.0 }
 0x415   :  { %2596 = vrsqrt.f32 %v1682_v34  ;;  %v1683_v10 = vadd.f32 1e-05, %v1667_v44  ;;  %v1668_v63 = vsub.f32 %v1636_v21, %v1652_v56  ;;  %v3776_v27 = vmul.f32 0.03125, %v1533_v15 }
 0x416   :  { %v1767_v6 = vadd.f32 %v3751_v4, %v1747_v52  ;;  %v1748_v25 = vmul.f32 %v1732_v18, %v1716_v14  ;;  %v1536_v47 = vpop.xlane.xlu1 %1535  ;;  %v1782_v29 = vmax.f32 %v1766_v48, 0.0  ;;  %v1733_v20 = vsub.f32 %v3625_v0, %v3731_v42 }
 0x417   :  { %2598 = vrsqrt.f32 %v1683_v10  ;;  %v1684_v24 = vadd.f32 1e-05, %v1668_v63  ;;  %v3782_v49 = vmul.f32 0.03125, %v1536_v47  ;;  %v1735_v31 = vsub.f32 %v3621_v7, %v3740_v3 }
 0x418   :  { %v1768_v55 = vadd.f32 %v3751_v4, %v1748_v25  ;;  %v1527_v60 = vpop.xlane.xlu0 %1526  ;;  %v1797_v45 = vpack.c.bf16 %v1782_v29, %v1781_v46  ;;  %v1783_v54 = vmax.f32 %v1767_v6, 0.0  ;;  %v1734_v13 = vsub.f32 %v3633_v11, %v3738_v23 }
 0x419   :  { %2600 = vrsqrt.f32 %v1684_v24  ;;  %v3771_v32 = vmul.f32 0.03125, %v1527_v60  ;;  %v1655_v57 = vmul.f32 %v3776_v27, %v3776_v27  ;;  %v1656_v34 = vmul.f32 %v3782_v49, %v3782_v49 }
 0x41a   :  { %v1784_v61 = vmax.f32 %v1768_v55, 0.0  ;;  %v1530_v51 = vpop.xlane.xlu1 %1529  ;;  %2343 = vmatprep.mubr.msk.bf16.mxu1 %vm107_vm0, %v1797_v45  ;;  %v1736_v14 = vsub.f32 %v3628_v5, %v3745_v40 }
 0x41b   :  { %v3774_v22 = vmul.f32 0.03125, %v1530_v51  ;;  %v1653_v53 = vmul.f32 %v3771_v32, %v3771_v32 }
 0x41c   :  { %v1607_v30 = vpop.xlane.xlu0 %1606  ;;  %v1798_v9 = vpack.c.bf16 %v1784_v61, %v1783_v54 }
 0x41d   :  { %v2595_v58 = vpop.eup %2594  ;;  %v1637_v16 = vmul.f32 0.03125, %v1607_v30  ;;  %v1654_v62 = vmul.f32 %v3774_v22, %v3774_v22 }
 0x41e   :  { %v1610_v17 = vpop.xlane.xlu1 %1609  ;;  %2344 = vmatmul.mubr.msk.bf16.vlgmr.msra.gmra.mrb[16].mxu1 %vm107_vm0, %v1798_v9  ;;  %v1717_v37 = vmul.f32 %v2595_v58, %v3736_v12 }
 0x41f   :  { %v2597_v35 = vpop.eup %2596  ;;  %v1669_v43 = vsub.f32 %v1637_v16, %v1653_v53  ;;  %v1638_v33 = vmul.f32 0.03125, %v1610_v17 }
 0x420   :  { %v1613_v0 = vpop.xlane.xlu0 %1612  ;;  %v1718_v42 = vmul.f32 %v2597_v35, %v3736_v12  ;;  %v1749_v19 = vmul.f32 %v1733_v20, %v1717_v37  ;;  %v1737_v35 = vsub.f32 %v3660_v36, %v3771_v32 }
 0x421   :  { %v2599_v56 = vpop.eup %2598  ;;  %v1685_v8 = vadd.f32 1e-05, %v1669_v43  ;;  %v1670_v39 = vsub.f32 %v1638_v33, %v1654_v62  ;;  %v1639_v59 = vmul.f32 0.03125, %v1613_v0 }
 0x422   :  { %v1616_v44 = vpop.xlane.xlu1 %1615  ;;  %v1750_v21 = vmul.f32 %v1734_v13, %v1718_v42  ;;  %v1769_v7 = vadd.f32 %v3751_v4, %v1749_v19  ;;  %v1719_v11 = vmul.f32 %v2599_v56, %v3736_v12  ;;  %v1739_v19 = vsub.f32 %v3656_v38, %v3776_v27 }
 0x423   :  { %v2601_v23 = vpop.eup %2600  ;;  %2602 = vrsqrt.f32 %v1685_v8  ;;  %v1686_v3 = vadd.f32 1e-05, %v1670_v39  ;;  %v1671_v18 = vsub.f32 %v1639_v59, %v1655_v57  ;;  %v1640_v52 = vmul.f32 0.03125, %v1616_v44 }
 0x424   :  { %v1545_v15 = vpop.xlane.xlu0 %1544  ;;  %v1770_v48 = vadd.f32 %v3751_v4, %v1750_v21  ;;  %v1720_v10 = vmul.f32 %v2601_v23, %v3736_v12  ;;  %v1751_v63 = vmul.f32 %v1735_v31, %v1719_v11  ;;  %v1785_v46 = vmax.f32 %v1769_v7, 0.0 }
 0x425   :  { %2604 = vrsqrt.f32 %v1686_v3  ;;  %v1687_v6 = vadd.f32 1e-05, %v1671_v18  ;;  %v1672_v25 = vsub.f32 %v1640_v52, %v1656_v34  ;;  %v3810_v20 = vmul.f32 0.03125, %v1545_v15 }
 0x426   :  { %v1548_v47 = vpop.xlane.xlu1 %1547  ;;  %v1786_v29 = vmax.f32 %v1770_v48, 0.0  ;;  %v1752_v24 = vmul.f32 %v1736_v14, %v1720_v10  ;;  %v1771_v55 = vadd.f32 %v3751_v4, %v1751_v63  ;;  %v1738_v56 = vsub.f32 %v3668_v41, %v3774_v22 }
 0x427   :  { %2606 = vrsqrt.f32 %v1687_v6  ;;  %v1688_v60 = vadd.f32 1e-05, %v1672_v25  ;;  %v3816_v62 = vmul.f32 0.03125, %v1548_v47  ;;  %v1659_v39 = vmul.f32 %v3810_v20, %v3810_v20 }
 0x428   :  { %v1539_v45 = vpop.xlane.xlu0 %1538  ;;  %v1799_v54 = vpack.c.bf16 %v1786_v29, %v1785_v46  ;;  %v1772_v5 = vadd.f32 %v3751_v4, %v1752_v24  ;;  %v1787_v51 = vmax.f32 %v1771_v55, 0.0  ;;  %v1740_v18 = vsub.f32 %v3663_v1, %v3782_v49 }
 0x429   :  { %2608 = vrsqrt.f32 %v1688_v60  ;;  %v3805_v40 = vmul.f32 0.03125, %v1539_v45  ;;  %v1660_v21 = vmul.f32 %v3816_v62, %v3816_v62 }
 0x42a   :  { %v1542_v61 = vpop.xlane.xlu1 %1541  ;;  %2347 = vmatprep.mubr.msk.bf16.mxu1 %vm107_vm0, %v1799_v54  ;;  %v1788_v30 = vmax.f32 %v1772_v5, 0.0 }
 0x42b   :  { %v3808_v9 = vmul.f32 0.03125, %v1542_v61  ;;  %v1657_v17 = vmul.f32 %v3805_v40, %v3805_v40  ;;  %v1741_v45 = vsub.f32 %v3692_v2, %v3805_v40 }
 0x42c   :  { %v1619_v58 = vpop.xlane.xlu0 %1618  ;;  %v1800_v53 = vpack.c.bf16 %v1788_v30, %v1787_v51 }
 0x42d   :  { %v2603_v16 = vpop.eup %2602  ;;  %v1641_v37 = vmul.f32 0.03125, %v1619_v58  ;;  %v1658_v13 = vmul.f32 %v3808_v9, %v3808_v9  ;;  %v1742_v61 = vsub.f32 %v3700_v26, %v3808_v9 }
 0x42e   :  { %v1622_v43 = vpop.xlane.xlu1 %1621  ;;  %2348 = vmatmul.mubr.msk.bf16.gmra.mrb[20].mxu1 %vm107_vm0, %v1800_v53  ;;  %v1721_v33 = vmul.f32 %v2603_v16, %v3736_v12  ;;  %v1743_v53 = vsub.f32 %v3688_v50, %v3810_v20 }
 0x42f   :  { %v2605_v31 = vpop.eup %2604  ;;  %v1673_v0 = vsub.f32 %v1641_v37, %v1657_v17  ;;  %v1642_v42 = vmul.f32 0.03125, %v1622_v43  ;;  %v1744_v37 = vsub.f32 %v3695_v28, %v3816_v62  ;;  %v2646_v28 = vmov 0.0|0.0   ;;  %v58_v62 = vld [vmem:[%s3934_s5 + $0xb] sm:$0x1] }
 0x430   :  { %v1625_v36 = vpop.xlane.xlu0 %1624  ;;  %v1722_v32 = vmul.f32 %v2605_v31, %v3736_v12  ;;  %v1753_v57 = vmul.f32 %v1737_v35, %v1721_v33  ;;  %2394 = vmatprep.subr.bf16.mxu1 %v2646_v28 }
 0x431   :  { %v2607_v8 = vpop.eup %2606  ;;  %v1689_v59 = vadd.f32 1e-05, %v1673_v0  ;;  %v1674_v34 = vsub.f32 %v1642_v42, %v1658_v13  ;;  %v1643_v44 = vmul.f32 0.03125, %v1625_v36 }
 0x432   :  { %v1628_v7 = vpop.xlane.xlu1 %1627  ;;  %v1754_v11 = vmul.f32 %v1738_v56, %v1722_v32  ;;  %v1773_v38 = vadd.f32 %v3751_v4, %v1753_v57  ;;  %v1723_v41 = vmul.f32 %v2607_v8, %v3736_v12  ;;  %v2649_v56 = vmov 0  }
 0x433   :  { %v2609_v22 = vpop.eup %2608  ;;  %2610 = vrsqrt.f32 %v1689_v59  ;;  %v1690_v27 = vadd.f32 1e-05, %v1674_v34  ;;  %v1675_v23 = vsub.f32 %v1643_v44, %v1659_v39  ;;  %v1644_v3 = vmul.f32 0.03125, %v1628_v7  ;;  %2447 = vset.pattern.permute.xlu0 %v2649_v56 }
 0x434   :  { %v1774_v52 = vadd.f32 %v3751_v4, %v1754_v11  ;;  %v1724_v14 = vmul.f32 %v2609_v22, %v3736_v12  ;;  %v1755_v15 = vmul.f32 %v1739_v19, %v1723_v41  ;;  %v1789_v63 = vmax.f32 %v1773_v38, 0.0  ;;  %1960 = vperm.xlu0 %2447, %v58_v62  }
 0x435   :  { %2612 = vrsqrt.f32 %v1690_v27  ;;  %v1691_v48 = vadd.f32 1e-05, %v1675_v23  ;;  %v1676_v10 = vsub.f32 %v1644_v3, %v1660_v21 }
 0x436   :  { %v1790_v6 = vmax.f32 %v1774_v52, 0.0  ;;  %v1756_v25 = vmul.f32 %v1740_v18, %v1724_v14  ;;  %v1775_v47 = vadd.f32 %v3751_v4, %v1755_v15 }
 0x437   :  { %2614 = vrsqrt.f32 %v1691_v48  ;;  %v1692_v46 = vadd.f32 1e-05, %v1676_v10 }
 0x438   :  { %v1801_v29 = vpack.c.bf16 %v1790_v6, %v1789_v63  ;;  %v1776_v24 = vadd.f32 %v3751_v4, %v1756_v25  ;;  %v1791_v1 = vmax.f32 %v1775_v47, 0.0 }
 0x439   :  { %2616 = vrsqrt.f32 %v1692_v46 }
 0x43a   :  { %2351 = vmatprep.mubr.msk.bf16.mxu1 %vm107_vm0, %v1801_v29  ;;  %v1792_v49 = vmax.f32 %v1776_v24, 0.0 }
 0x43c   :  { %v1802_v55 = vpack.c.bf16 %v1792_v49, %v1791_v1 }
 0x43d   :  { %v2611_v60 = vpop.eup %2610 }
 0x43e   :  { %2352 = vmatmul.mubr.msk.bf16.gmra.mrb[24].mxu1 %vm107_vm0, %v1802_v55  ;;  %v1725_v54 = vmul.f32 %v2611_v60, %v3736_v12 }
 0x43f   :  { %v2613_v5 = vpop.eup %2612 }
 0x440   :  { %v1726_v51 = vmul.f32 %v2613_v5, %v3736_v12  ;;  %v1757_v30 = vmul.f32 %v1741_v45, %v1725_v54 }
 0x441   :  { %v2615_v58 = vpop.eup %2614 }
 0x442   :  { %v1758_v16 = vmul.f32 %v1742_v61, %v1726_v51  ;;  %v1777_v17 = vadd.f32 %v3751_v4, %v1757_v30  ;;  %v1727_v2 = vmul.f32 %v2615_v58, %v3736_v12 }
 0x443   :  { %v2617_v40 = vpop.eup %2616 }
 0x444   :  { %v1728_v35 = vmul.f32 %v2617_v40, %v3736_v12  ;;  %v1778_v26 = vadd.f32 %v3751_v4, %v1758_v16  ;;  %v1759_v9 = vmul.f32 %v1743_v53, %v1727_v2  ;;  %v1793_v43 = vmax.f32 %v1777_v17, 0.0 }
 0x445   :  { %v2648_v12 = vmov 0.0  }
 0x446   :  { %v1794_v33 = vmax.f32 %v1778_v26, 0.0  ;;  %v1760_v31 = vmul.f32 %v1744_v37, %v1728_v35  ;;  %v1779_v13 = vadd.f32 %v3751_v4, %v1759_v9 }
 0x448   :  { %v1803_v50 = vpack.c.bf16 %v1794_v33, %v1793_v43  ;;  %v1780_v20 = vadd.f32 %v3751_v4, %v1760_v31  ;;  %v1795_v0 = vmax.f32 %v1779_v13, 0.0  ;;  %v3866_v4 = vld [vmem:[%s3934_s5 + $0x9] ss:$0 sm:$0xff] }
 0x44a   :  { %2355 = vmatprep.mubr.msk.bf16.mxu1 %vm107_vm0, %v1803_v50  ;;  %v1796_v42 = vmax.f32 %v1780_v20, 0.0 }
 0x44c   :  { %v1804_v19 = vpack.c.bf16 %v1796_v42, %v1795_v0  ;;  %v57_v42 = vld [vmem:[%s3934_s5 + $0xa] sm:$0x1] }
 0x44e   :  { %2356 = vmatmul.mubr.msk.bf16.gmra.mrb[28].mxu1 %vm107_vm0, %v1804_v19 }
 0x44f   :  { %2391 = vmatprep.mubr.msk.f32.mxu1 %vm2647_vm1, %v2648_v12 }
 0x4b3   :  { %v1961_v19 = vpop.permute.xlu0 %1960 }
 0x4f1   :  { %v2345_v36 = vpop.f32.mrb[16].mxu1 }
 0x4f2   :  { %v1888_v32 = vadd.f32 %v2345_v36, %v3866_v4  ;;  %v1879_v57 = vpop.f32.mrb[17].mxu1 }
 0x4f3   :  { %v1880_v8 = vadd.f32 %v3866_v4, %v1879_v57  ;;  %v2346_v39 = vpop.f32.mrb[18].mxu1 }
 0x4f4   :  { %v1891_v59 = vadd.f32 %v2346_v39, %v3866_v4  ;;  %v1882_v34 = vpop.f32.mrb[19].mxu1  ;;  %v1944_v21 = vmax.f32 %v1888_v32, 0.0 }
 0x4f5   :  { %v1883_v44 = vadd.f32 %v3866_v4, %v1882_v34  ;;  %v1942_v11 = vmax.f32 %v1880_v8, 0.0 }
 0x4f6   :  { %v1945_v7 = vmax.f32 %v1891_v59, 0.0 }
 0x4f7   :  { %v1943_v38 = vmax.f32 %v1883_v44, 0.0 }
 0x4f8   :  { %v2399_v41 = vpack.c.bf16 %v1945_v7, %v1944_v21 }
 0x4f9   :  { %v2395_v27 = vpack.c.bf16 %v1943_v38, %v1942_v11 }
 0x4fb   :  { %2397 = vmatpush3.bf16.xpose.msk.msra.mxu1 %vm3874_vm3, %v2395_v27 }
 0x4fc   :  { %2398 = vmatprep.subr.bf16.mxu1 %v2646_v28 }
 0x501   :  { %v2349_v23 = vpop.f32.mrb[20].mxu1 }
 0x502   :  { %v1904_v3 = vadd.f32 %v2349_v23, %v3866_v4  ;;  %v1895_v18 = vpop.f32.mrb[21].mxu1 }
 0x503   :  { %v1896_v52 = vadd.f32 %v3866_v4, %v1895_v18  ;;  %v2350_v14 = vpop.f32.mrb[22].mxu1  ;;  %2401 = vmatpush3.bf16.xpose.msk.msra.mxu1 %vm3874_vm3, %v2399_v41 }
 0x504   :  { %v1907_v15 = vadd.f32 %v2350_v14, %v3866_v4  ;;  %v1898_v48 = vpop.f32.mrb[23].mxu1  ;;  %2402 = vmatprep.subr.bf16.mxu1 %v2646_v28  ;;  %v1948_v63 = vmax.f32 %v1904_v3, 0.0 }
 0x505   :  { %v1899_v10 = vadd.f32 %v3866_v4, %v1898_v48  ;;  %v1946_v25 = vmax.f32 %v1896_v52, 0.0 }
 0x506   :  { %v1949_v6 = vmax.f32 %v1907_v15, 0.0 }
 0x507   :  { %v1947_v47 = vmax.f32 %v1899_v10, 0.0 }
 0x508   :  { %v2407_v46 = vpack.c.bf16 %v1949_v6, %v1948_v63 }
 0x509   :  { %v2403_v29 = vpack.c.bf16 %v1947_v47, %v1946_v25 }
 0x50b   :  { %2405 = vmatpush3.bf16.xpose.msk.msra.mxu1 %vm3874_vm3, %v2403_v29 }
 0x50c   :  { %2406 = vmatprep.subr.bf16.mxu1 %v2646_v28 }
 0x511   :  { %v2353_v24 = vpop.f32.mrb[24].mxu1 }
 0x512   :  { %v1920_v1 = vadd.f32 %v2353_v24, %v3866_v4  ;;  %v1911_v49 = vpop.f32.mrb[25].mxu1 }
 0x513   :  { %v1912_v55 = vadd.f32 %v3866_v4, %v1911_v49  ;;  %v2354_v60 = vpop.f32.mrb[26].mxu1  ;;  %2409 = vmatpush3.bf16.xpose.msk.msra.mxu1 %vm3874_vm3, %v2407_v46 }
 0x514   :  { %v1923_v45 = vadd.f32 %v2354_v60, %v3866_v4  ;;  %v1914_v54 = vpop.f32.mrb[27].mxu1  ;;  %2410 = vmatprep.subr.bf16.mxu1 %v2646_v28  ;;  %v1952_v61 = vmax.f32 %v1920_v1, 0.0 }
 0x515   :  { %v1915_v5 = vadd.f32 %v3866_v4, %v1914_v54  ;;  %v1950_v30 = vmax.f32 %v1912_v55, 0.0 }
 0x516   :  { %v1953_v51 = vmax.f32 %v1923_v45, 0.0 }
 0x517   :  { %v1951_v58 = vmax.f32 %v1915_v5, 0.0 }
 0x518   :  { %v2415_v53 = vpack.c.bf16 %v1953_v51, %v1952_v61 }
 0x519   :  { %v2411_v16 = vpack.c.bf16 %v1951_v58, %v1950_v30 }
 0x51b   :  { %2413 = vmatpush3.bf16.xpose.msk.msra.mxu1 %vm3874_vm3, %v2411_v16 }
 0x51c   :  { %2414 = vmatprep.subr.bf16.mxu1 %v2646_v28 }
 0x521   :  { %v2357_v17 = vpop.f32.mrb[28].mxu1 }
 0x522   :  { %v1936_v2 = vadd.f32 %v2357_v17, %v3866_v4  ;;  %v1927_v40 = vpop.f32.mrb[29].mxu1 }
 0x523   :  { %v1928_v37 = vadd.f32 %v3866_v4, %v1927_v40  ;;  %v2358_v35 = vpop.f32.mrb[30].mxu1  ;;  %2417 = vmatpush3.bf16.xpose.msk.msra.mxu1 %vm3874_vm3, %v2415_v53 }
 0x524   :  { %v1939_v26 = vadd.f32 %v2358_v35, %v3866_v4  ;;  %v1930_v9 = vpop.f32.mrb[31].mxu1  ;;  %2418 = vmatprep.subr.bf16.mxu1 %v2646_v28  ;;  %v1956_v33 = vmax.f32 %v1936_v2, 0.0 }
 0x525   :  { %v1931_v43 = vadd.f32 %v3866_v4, %v1930_v9  ;;  %v1954_v13 = vmax.f32 %v1928_v37, 0.0 }
 0x526   :  { %v1957_v31 = vmax.f32 %v1939_v26, 0.0 }
 0x527   :  { %v1955_v50 = vmax.f32 %v1931_v43, 0.0 }
 0x528   :  { %v2423_v20 = vpack.c.bf16 %v1957_v31, %v1956_v33 }
 0x529   :  { %v2419_v0 = vpack.c.bf16 %v1955_v50, %v1954_v13 }
 0x52b   :  { %2421 = vmatpush3.bf16.xpose.msk.msra.mxu1 %vm3874_vm3, %v2419_v0 }
 0x52c   :  { %2422 = vmatprep.subr.bf16.mxu1 %v2646_v28 }
 0x533   :  { %2425 = vmatpush3.bf16.xpose.msk.msra.mxu1 %vm3874_vm3, %v2423_v20 }
 0x53a   :  { %2392 = vmatmul.mubr.msk.f32.vlgmr.msra.gmra.mrb[32].mxu1 %vm1963_vm2, %v57_v42 }
 0x60d   :  { %v2081_v12 = vpop.f32.mrb[32].mxu1 }
 0x60e   :  { %v2082_v62 = vadd.f32 %v2081_v12, %v1961_v19  ;;  %v2393_v56 = vpop.f32.mrb[33].mxu1 }
 0x610   :  { %v2191_v4 = vmul.f32 -1.442695, %v2082_v62 }
 0x612   :  { %2618 = vpow2.f32 %v2191_v4 }
 0x61c   :  { %v2619_v36 = vpop.eup %2618 }
 0x61d   :  { %v2088_v32 = vadd.f32 1.0, %v2619_v36 }
 0x61f   :  { %2620 = vrcp.f32 %v2088_v32 }
 0x629   :  { %v2621_v28 = vpop.eup %2620 }
 0x62a   :  { %2091 = vst [vmem:[#allocation2] sm:$0x1] %v2621_v28 }
 0x62b   :  { %2633 = shalt.err (!%p2630_p4)
}
 0x62c   :  { %s2634_s29 = scalar_lea.hbm %s3935_s6, 16 }
 0x62d   :  { %p2635_p5 = scmp.ne.s32.totalorder %s3935_s6, %s2634_s29  ;;  %p2638_p6 = scmp.lt.u32.totalorder %s2634_s29, %s3935_s6 }
 0x62f   :  { %p2640_p7 = pnand %p2638_p6, %p2635_p5 }
 0x631   :  { %2643 = shalt.err (!%p2640_p7)
}
 0x632   :  { %2101 = dma.vmem_to_hbm [thread:$0]  %s2099_s25, 16, %s3935_s6, [#allocation3]  }
 0x633   :  { %2644 = dma.done.wait [#allocation3], 16  }
 0x634   :  { %2645 = vsyncadd [#allocation3], 4294967280 }
 0x635   :  { %2105 = vsyncpa [#allocation3], 1 }

</bundles_post_ra>
